<compile_context>
chip_gen: v7x
topology: tpu7x:2x2x1
jax: 0.10.0
libtpu: 0.0.40
codegen_flags: <defaults>
</compile_context>

<pallas_src>
import functools

import numpy as np
import jax
import jax.numpy as jnp
from jax.experimental import pallas as pl
from jax.experimental.pallas import tpu as pltpu


# ---------------------------------------------------------------------------
# Constant interpolation matrices (NumPy, cached -> folded as bf16 constants).
# ---------------------------------------------------------------------------
@functools.lru_cache(maxsize=None)
def _interp_matrix(out_size: int, in_size: int) -> np.ndarray:
    """Row-interpolation matrix matching torch.nn.functional.interpolate
    (mode='bilinear', align_corners=False). Shape (out_size, in_size), f32."""
    scale = in_size / out_size
    dst = np.arange(out_size, dtype=np.float64)
    src = np.maximum((dst + 0.5) * scale - 0.5, 0.0)   # PyTorch clamps negatives to 0
    i0 = np.minimum(np.floor(src).astype(np.int64), in_size - 1)
    i1 = np.minimum(i0 + 1, in_size - 1)
    w1 = src - i0
    w0 = 1.0 - w1
    m = np.zeros((out_size, in_size), dtype=np.float32)
    rows = np.arange(out_size)
    np.add.at(m, (rows, i0), w0.astype(np.float32))
    np.add.at(m, (rows, i1), w1.astype(np.float32))
    return m


@functools.lru_cache(maxsize=None)
def _interp_matrix_padded(out_size: int, in_size: int, padded_in: int) -> np.ndarray:
    """A_h with its column (input-height) axis zero-padded to `padded_in` so the
    reduction grid can be cdiv(in_h, tk); padded columns are exact zeros."""
    m = _interp_matrix(out_size, in_size)
    if padded_in == in_size:
        return m
    mp = np.zeros((out_size, padded_in), dtype=np.float32)
    mp[:, :in_size] = m
    return mp


# ---------------------------------------------------------------------------
# Hardware queries (trace-time, best effort).
# ---------------------------------------------------------------------------
def _tpu_info():
    try:
        return pltpu.get_tpu_info()
    except Exception:
        return None


@functools.lru_cache(maxsize=None)
def _vmem_capacity_bytes() -> int:
    cap = getattr(_tpu_info(), "vmem_capacity_bytes", None)
    if isinstance(cap, int) and cap > 0:
        return cap
    return 64 * 2**20            # conservative default (v7x-sized)


@functools.lru_cache(maxsize=None)
def _num_tensorcores() -> int:
    # v7x has 2 TensorCores per chip; v5e/v6e have 1.  Best-effort detection.
    try:
        kind = (getattr(jax.devices()[0], "device_kind", "") or "").lower()
        if "v7" in kind or "7x" in kind:
            return 2
    except Exception:
        pass
    return 1


def _pick_row_tile(in_h: int, in_w: int, itemsize: int, band_budget: int):
    """Input-row band height tk (reduction tile).  Returns (tk, n_k, in_h_padded).
    Big images: tk is a multiple of 128 and the grid is cdiv(in_h, tk) (tail rows
    masked in-kernel).  Small images: one full-height band."""
    row_bytes = max(in_w * itemsize, 1)
    if in_h * row_bytes <= band_budget or in_h < 128:
        # TODO(synk): multiple-of-8 sublane bands for extremely wide, short images.
        return in_h, 1, in_h
    tk = (band_budget // row_bytes) // 128 * 128
    tk = int(max(128, min(tk, (in_h // 128) * 128)))
    n_k = int(pl.cdiv(in_h, tk))
    return tk, n_k, tk * n_k


# ---------------------------------------------------------------------------
# Kernel: per-band bf16 MXU contribution + single finalize epilogue.
# ---------------------------------------------------------------------------
def _resize_kernel(ah_ref, x_ref, awt_ref, o_ref, *,
                   scaling_scheme: str, normalize: bool,
                   in_h: int, tk: int, mask_rows: bool):
    k = pl.program_id(1)                                  # in_h reduction axis

    @pl.when(k == 0)
    def _():
        o_ref[...] = jnp.zeros_like(o_ref)

    # Width resize of this input-row band (bf16 operands -> native MXU path, f32
    # accumulation), then its height contribution into the resident f32 output
    # block.  Summing banded contributions over k gives exact A_h @ X @ A_w^T.
    x = x_ref[...].astype(jnp.bfloat16)                   # in-kernel cast (native-dtype DMA)
    tmp = jnp.dot(x, awt_ref[...], preferred_element_type=jnp.float32)   # (tk, tw) f32
    if mask_rows:
        # The last band may overhang the true in_h; those X rows are undefined.
        # Zero them (A_h's padded columns are already exact zeros).
        rows = k * tk + jax.lax.broadcasted_iota(jnp.int32, tmp.shape, 0)
        tmp = jnp.where(rows < in_h, tmp, 0.0)
    o_ref[...] += jnp.dot(ah_ref[...], tmp.astype(jnp.bfloat16),
                          preferred_element_type=jnp.float32)

    @pl.when(k == pl.num_programs(1) - 1)
    def _():
        out = jnp.maximum(o_ref[...], 0.0)                # clamp(min=0)
        if scaling_scheme == "log":
            out = jnp.log1p(out)
        elif scaling_scheme == "tanh":
            out = jnp.tanh(out)
        # "none": passthrough
        if normalize:
            # torch.Tensor.std() is unbiased (ddof=1).  Only legal because the
            # output block spans the full (out_h, out_w): the wrapper forces a
            # single out_w band when normalize=True.
            n = out.size
            mean = jnp.mean(out)
            var = jnp.sum((out - mean) ** 2) * (1.0 / max(n - 1, 1))
            out = (out - mean) * jax.lax.rsqrt(var)
        o_ref[...] = out.astype(o_ref.dtype)


# ---------------------------------------------------------------------------
# Wrapper.
# ---------------------------------------------------------------------------
@functools.partial(jax.jit, static_argnums=(1, 2, 3, 4, 5))
def _simple_resize_impl(img, size, scaling_scheme, normalize, band_budget, use_buffered):
    if img.ndim == 2:
        img = img[None]                                   # (1, H, W) metadata-only
    elif img.ndim != 3:
        raise ValueError(f"expected 2-D or 3-D image, got ndim={img.ndim}")
    # Channel handling (keep channel 0) is done purely by the X BlockSpec
    # (leading squeezed dim): only channel 0 is ever DMA'd.

    _, in_h, in_w = img.shape
    out_h, out_w = size
    itemsize = jnp.dtype(img.dtype).itemsize

    vmem_cap = _vmem_capacity_bytes()
    if band_budget is None:
        # ~8 MiB X bands on 128 MiB-VMEM chips (v5e/v6e), ~4 MiB on v7x.
        band_budget = max(1 << 20, min(16 << 20, vmem_cap // 16))

    tk, n_k, in_h_pad = _pick_row_tile(in_h, in_w, itemsize, int(band_budget))
    mask_rows = in_h_pad != in_h

    # Dual-TensorCore split of out_w (v7x): splits BOTH matmuls with no recompute.
    # Disabled when whole-output normalization is requested or on single-TC chips
    # (where it would only double X HBM traffic).
    n_p = 2 if (_num_tensorcores() >= 2 and not normalize and out_w % 256 == 0) else 1
    tw = out_w // n_p

    a_h = jnp.asarray(_interp_matrix_padded(out_h, in_h, in_h_pad), dtype=jnp.bfloat16)
    a_wt = jnp.asarray(_interp_matrix(out_w, in_w).T, dtype=jnp.bfloat16)

    kernel = functools.partial(
        _resize_kernel, scaling_scheme=scaling_scheme, normalize=normalize,
        in_h=in_h, tk=tk, mask_rows=mask_rows)

    # A_w^T's block index is constant over the reduction axis: one pipeline buffer
    # is enough (saves in_w*out_w*2 bytes of VMEM).  Fallback handled by caller.
    if use_buffered and n_p == 1:
        awt_spec = pl.BlockSpec((in_w, tw), lambda p, k: (0, p),
                                pipeline_mode=pl.Buffered(1))
    else:
        awt_spec = pl.BlockSpec((in_w, tw), lambda p, k: (0, p))

    # VMEM footprint estimate -> scoped-limit hint, capped at 85% of physical VMEM.
    est = (2 * tk * in_w * itemsize        # X band (double-buffered, native dtype)
           + 2 * out_h * tk * 2            # A_h band (bf16, double-buffered)
           + 2 * in_w * tw * 2             # A_w^T (bf16)
           + 2 * out_h * tw * 4            # output block == f32 accumulator
           + 2 * tk * max(in_w, tw) * 4)   # in-kernel temporaries
    vmem_limit = int(min(max(2 * est, 32 << 20), int(0.85 * vmem_cap)))

    grid_spec = pltpu.PrefetchScalarGridSpec(
        num_scalar_prefetch=0,
        grid=(n_p, n_k),                                  # (out_w split, in_h reduction)
        in_specs=[
            pl.BlockSpec((out_h, tk), lambda p, k: (0, k)),          # A_h column band
            pl.BlockSpec((None, tk, in_w), lambda p, k: (0, k, 0)),  # X row band, channel 0
            awt_spec,                                                # A_w^T
        ],
        out_specs=pl.BlockSpec((out_h, tw), lambda p, k: (0, p)),
    )

    out2d = pl.pallas_call(
        kernel,
        out_shape=jax.ShapeDtypeStruct((out_h, out_w), jnp.float32),
        grid_spec=grid_spec,
        compiler_params=pltpu.CompilerParams(
            dimension_semantics=("parallel", "arbitrary"),
            vmem_limit_bytes=vmem_limit),
    )(a_h, img, a_wt)

    return out2d[None]                                    # (1, out_h, out_w)


_BUFFERED_OK = True      # flipped off once if this jax build rejects pl.Buffered(1)


def simple_resize(img, size=(256, 256), scaling_scheme="log", normalize=False,
                  *, band_budget_bytes=None):
    """JAX/Pallas equivalent of SimpleResize.forward; returns (1, H_out, W_out) f32."""
    global _BUFFERED_OK
    budget = None if band_budget_bytes is None else int(band_budget_bytes)
    args = (jnp.asarray(img), tuple(int(s) for s in size), str(scaling_scheme),
            bool(normalize), budget)
    if _BUFFERED_OK:
        try:
            return _simple_resize_impl(*args, True)
        except Exception:
            _BUFFERED_OK = False      # retry once without pipeline_mode=Buffered(1)
    return _simple_resize_impl(*args, False)


# ---------------------------------------------------------------------------
# Pure-JAX f32 reference (same weights, no bf16) for correctness checks.
# ---------------------------------------------------------------------------
def _reference(img, size, scaling_scheme, normalize):
    img = jnp.asarray(img, jnp.float32)
    if img.ndim == 2:
        img = img[None]
    x = img[0]
    a_h = jnp.asarray(_interp_matrix(size[0], x.shape[0]))
    a_w = jnp.asarray(_interp_matrix(size[1], x.shape[1]))
    out = jnp.maximum(a_h @ x @ a_w.T, 0.0)
    if scaling_scheme == "log":
        out = jnp.log1p(out)
    elif scaling_scheme == "tanh":
        out = jnp.tanh(out)
    if normalize:
        out = (out - out.mean()) / jnp.std(out, ddof=1)
    return out[None]


if __name__ == "__main__":
    key = jax.random.PRNGKey(0)
    k1, k2 = jax.random.split(key)

    # Multi-channel image; the module keeps only channel 0.
    x = jax.random.uniform(k1, (4, 16, 16), dtype=jnp.float32) * 5.0 - 1.0

    # Default module config: size=(256,256), log scaling (lane-dense 256-wide output).
    out = jax.block_until_ready(simple_resize(x, (256, 256), "log", False))
    assert out.shape == (1, 256, 256) and out.dtype == jnp.float32
    assert bool(jnp.all(out >= 0.0))                      # clamp + log1p => non-negative
    ref = _reference(x, (256, 256), "log", False)
    assert float(jnp.max(jnp.abs(out - ref))) < 0.1       # bf16-MXU tolerance

    # 2-D input path + tanh scaling + whole-output normalize (single out_w band).
    out2 = jax.block_until_ready(simple_resize(x[0], (32, 32), "tanh", True))
    assert out2.shape == (1, 32, 32)
    assert bool(jnp.all(jnp.isfinite(out2)))
    ref2 = _reference(x[0], (32, 32), "tanh", True)
    assert float(jnp.max(jnp.abs(out2 - ref2))) < 0.5

    # Ragged in_h: exercises the cdiv grid + zero-padded A_h + tail-row mask path
    # (band budget shrunk so in_h=200 tiles as two 128-row bands).
    y = jax.random.uniform(k2, (1, 200, 160), dtype=jnp.float32) * 3.0
    out3 = jax.block_until_ready(
        simple_resize(y, (64, 128), "log", False, band_budget_bytes=96 * 1024))
    assert out3.shape == (1, 64, 128)
    ref3 = _reference(y, (64, 128), "log", False)
    assert float(jnp.max(jnp.abs(out3 - ref3))) < 0.1

    print("KERNEL_OK")
</pallas_src>

<mosaic_0001>
module attributes {stable_mosaic.version = 11 : i64} {
  func.func @_resize_kernel(%arg0: i32, %arg1: i32, %arg2: memref<256x16xbf16, #tpu.memory_space<vmem>>, %arg3: memref<1x16x16xf32, #tpu.memory_space<vmem>>, %arg4: memref<16x256xbf16, #tpu.memory_space<vmem>>, %arg5: memref<256x256xf32, #tpu.memory_space<vmem>>) attributes {dimension_semantics = [#tpu.dimension_semantics<parallel>, #tpu.dimension_semantics<arbitrary>], iteration_bounds = array<i64: 1, 1>, scalar_prefetch = 0 : i64, scratch_operands = 0 : i64, tpu.core_type = #tpu.core_type<tc>, window_params = [{transform_indices = @transform_0, window_bounds = array<i64: 256, 16>}, {transform_indices = @transform_1, window_bounds = array<i64: 1, 16, 16>}, {pipeline_mode = #tpu.pipeline_mode<synchronous>, transform_indices = @transform_2, window_bounds = array<i64: 16, 256>}, {transform_indices = @transform_3, window_bounds = array<i64: 256, 256>}]} {
    %c0_i32 = arith.constant 0 : i32
    %0 = arith.cmpi eq, %arg1, %c0_i32 : i32
    %1 = arith.extui %0 : i1 to i32
    %c0_i32_0 = arith.constant 0 : i32
    %2 = arith.cmpi ne, %1, %c0_i32_0 : i32
    scf.if %2 {
      %cst_14 = arith.constant 0.000000e+00 : f32
      %17 = vector.broadcast %cst_14 : f32 to vector<256x256xf32>
      %c0_15 = arith.constant 0 : index
      %c0_16 = arith.constant 0 : index
      %18 = vector.load %arg5[%c0_15, %c0_16] : memref<256x256xf32, #tpu.memory_space<vmem>>, vector<256x256xf32>
      tpu.vector_store %arg5[%c0_15, %c0_16], %17 {strides = array<i32>} : memref<256x256xf32, #tpu.memory_space<vmem>>, vector<256x256xf32>,
    } else {
    }
    %c0 = arith.constant 0 : index
    %c0_1 = arith.constant 0 : index
    %c0_2 = arith.constant 0 : index
    %3 = vector.load %arg3[%c0, %c0_1, %c0_2] : memref<1x16x16xf32, #tpu.memory_space<vmem>>, vector<1x16x16xf32>
    %4 = vector.shape_cast %3 : vector<1x16x16xf32> to vector<16x16xf32>
    %5 = arith.truncf %4 : vector<16x16xf32> to vector<16x16xbf16>
    %c0_3 = arith.constant 0 : index
    %c0_4 = arith.constant 0 : index
    %6 = vector.load %arg4[%c0_3, %c0_4] : memref<16x256xbf16, #tpu.memory_space<vmem>>, vector<16x256xbf16>
    %cst = arith.constant dense<0.000000e+00> : vector<16x256xf32>
    %7 = tpu.matmul %5, %6, %cst {dimension_numbers = #tpu.dot_dimension_numbers<[1], [0], [0], [1], [0, 0, 1, 1], [], []>} : vector<16x16xbf16>, vector<16x256xbf16>, vector<16x256xf32> -> vector<16x256xf32>
    %c0_5 = arith.constant 0 : index
    %c0_6 = arith.constant 0 : index
    %8 = vector.load %arg5[%c0_5, %c0_6] : memref<256x256xf32, #tpu.memory_space<vmem>>, vector<256x256xf32>
    %c0_7 = arith.constant 0 : index
    %c0_8 = arith.constant 0 : index
    %9 = vector.load %arg2[%c0_7, %c0_8] : memref<256x16xbf16, #tpu.memory_space<vmem>>, vector<256x16xbf16>
    %10 = arith.truncf %7 : vector<16x256xf32> to vector<16x256xbf16>
    %cst_9 = arith.constant dense<0.000000e+00> : vector<256x256xf32>
    %11 = tpu.matmul %9, %10, %cst_9 {dimension_numbers = #tpu.dot_dimension_numbers<[1], [0], [0], [1], [0, 0, 1, 1], [], []>} : vector<256x16xbf16>, vector<16x256xbf16>, vector<256x256xf32> -> vector<256x256xf32>
    %12 = arith.addf %8, %11 : vector<256x256xf32>
    %c0_10 = arith.constant 0 : index
    %c0_11 = arith.constant 0 : index
    %13 = vector.load %arg5[%c0_10, %c0_11] : memref<256x256xf32, #tpu.memory_space<vmem>>, vector<256x256xf32>
    tpu.vector_store %arg5[%c0_10, %c0_11], %12 {strides = array<i32>} : memref<256x256xf32, #tpu.memory_space<vmem>>, vector<256x256xf32>,
    %c0_i32_12 = arith.constant 0 : i32
    %14 = arith.cmpi eq, %arg1, %c0_i32_12 : i32
    %15 = arith.extui %14 : i1 to i32
    %c0_i32_13 = arith.constant 0 : i32
    %16 = arith.cmpi ne, %15, %c0_i32_13 : i32
    scf.if %16 {
      %c0_14 = arith.constant 0 : index
      %c0_15 = arith.constant 0 : index
      %17 = vector.load %arg5[%c0_14, %c0_15] : memref<256x256xf32, #tpu.memory_space<vmem>>, vector<256x256xf32>
      %cst_16 = arith.constant 0.000000e+00 : f32
      %18 = vector.broadcast %cst_16 : f32 to vector<256x256xf32>
      %19 = arith.maximumf %17, %18 : vector<256x256xf32>
      %20 = math.log1p %19 : vector<256x256xf32>
      %c0_17 = arith.constant 0 : index
      %c0_18 = arith.constant 0 : index
      %21 = vector.load %arg5[%c0_17, %c0_18] : memref<256x256xf32, #tpu.memory_space<vmem>>, vector<256x256xf32>
      tpu.vector_store %arg5[%c0_17, %c0_18], %20 {strides = array<i32>} : memref<256x256xf32, #tpu.memory_space<vmem>>, vector<256x256xf32>,
    } else {
    }
    return
  }
  func.func @transform_0(%arg0: i32, %arg1: i32) -> (i32, i32) {
    %c0_i32 = arith.constant 0 : i32
    %c0_i32_0 = arith.constant 0 : i32
    return %c0_i32, %arg1 : i32, i32
  }
  func.func @transform_1(%arg0: i32, %arg1: i32) -> (i32, i32, i32) {
    %c0_i32 = arith.constant 0 : i32
    %c0_i32_0 = arith.constant 0 : i32
    %c0_i32_1 = arith.constant 0 : i32
    return %c0_i32, %arg1, %c0_i32_0 : i32, i32, i32
  }
  func.func @transform_2(%arg0: i32, %arg1: i32) -> (i32, i32) {
    %c0_i32 = arith.constant 0 : i32
    %c0_i32_0 = arith.constant 0 : i32
    return %c0_i32, %arg0 : i32, i32
  }
  func.func @transform_3(%arg0: i32, %arg1: i32) -> (i32, i32) {
    %c0_i32 = arith.constant 0 : i32
    %c0_i32_0 = arith.constant 0 : i32
    return %c0_i32, %arg0 : i32, i32
  }
}

module attributes {stable_mosaic.version = 11 : i64} {
  func.func @_resize_kernel(%arg0: i32, %arg1: i32, %arg2: memref<256x16xbf16, #tpu.memory_space<vmem>>, %arg3: memref<1x16x16xf32, #tpu.memory_space<vmem>>, %arg4: memref<16x256xbf16, #tpu.memory_space<vmem>>, %arg5: memref<256x256xf32, #tpu.memory_space<vmem>>) attributes {dimension_semantics = [#tpu.dimension_semantics<parallel>, #tpu.dimension_semantics<arbitrary>], iteration_bounds = array<i64: 1, 1>, scalar_prefetch = 0 : i64, scratch_operands = 0 : i64, tpu.core_type = #tpu.core_type<tc>, window_params = [{transform_indices = @transform_0, window_bounds = array<i64: 256, 16>}, {transform_indices = @transform_1, window_bounds = array<i64: 1, 16, 16>}, {transform_indices = @transform_2, window_bounds = array<i64: 16, 256>}, {transform_indices = @transform_3, window_bounds = array<i64: 256, 256>}]} {
    %c0_i32 = arith.constant 0 : i32
    %0 = arith.cmpi eq, %arg1, %c0_i32 : i32
    %1 = arith.extui %0 : i1 to i32
    %c0_i32_0 = arith.constant 0 : i32
    %2 = arith.cmpi ne, %1, %c0_i32_0 : i32
    scf.if %2 {
      %cst_14 = arith.constant 0.000000e+00 : f32
      %17 = vector.broadcast %cst_14 : f32 to vector<256x256xf32>
      %c0_15 = arith.constant 0 : index
      %c0_16 = arith.constant 0 : index
      %18 = vector.load %arg5[%c0_15, %c0_16] : memref<256x256xf32, #tpu.memory_space<vmem>>, vector<256x256xf32>
      tpu.vector_store %arg5[%c0_15, %c0_16], %17 {strides = array<i32>} : memref<256x256xf32, #tpu.memory_space<vmem>>, vector<256x256xf32>,
    } else {
    }
    %c0 = arith.constant 0 : index
    %c0_1 = arith.constant 0 : index
    %c0_2 = arith.constant 0 : index
    %3 = vector.load %arg3[%c0, %c0_1, %c0_2] : memref<1x16x16xf32, #tpu.memory_space<vmem>>, vector<1x16x16xf32>
    %4 = vector.shape_cast %3 : vector<1x16x16xf32> to vector<16x16xf32>
    %5 = arith.truncf %4 : vector<16x16xf32> to vector<16x16xbf16>
    %c0_3 = arith.constant 0 : index
    %c0_4 = arith.constant 0 : index
    %6 = vector.load %arg4[%c0_3, %c0_4] : memref<16x256xbf16, #tpu.memory_space<vmem>>, vector<16x256xbf16>
    %cst = arith.constant dense<0.000000e+00> : vector<16x256xf32>
    %7 = tpu.matmul %5, %6, %cst {dimension_numbers = #tpu.dot_dimension_numbers<[1], [0], [0], [1], [0, 0, 1, 1], [], []>} : vector<16x16xbf16>, vector<16x256xbf16>, vector<16x256xf32> -> vector<16x256xf32>
    %c0_5 = arith.constant 0 : index
    %c0_6 = arith.constant 0 : index
    %8 = vector.load %arg5[%c0_5, %c0_6] : memref<256x256xf32, #tpu.memory_space<vmem>>, vector<256x256xf32>
    %c0_7 = arith.constant 0 : index
    %c0_8 = arith.constant 0 : index
    %9 = vector.load %arg2[%c0_7, %c0_8] : memref<256x16xbf16, #tpu.memory_space<vmem>>, vector<256x16xbf16>
    %10 = arith.truncf %7 : vector<16x256xf32> to vector<16x256xbf16>
    %cst_9 = arith.constant dense<0.000000e+00> : vector<256x256xf32>
    %11 = tpu.matmul %9, %10, %cst_9 {dimension_numbers = #tpu.dot_dimension_numbers<[1], [0], [0], [1], [0, 0, 1, 1], [], []>} : vector<256x16xbf16>, vector<16x256xbf16>, vector<256x256xf32> -> vector<256x256xf32>
    %12 = arith.addf %8, %11 : vector<256x256xf32>
    %c0_10 = arith.constant 0 : index
    %c0_11 = arith.constant 0 : index
    %13 = vector.load %arg5[%c0_10, %c0_11] : memref<256x256xf32, #tpu.memory_space<vmem>>, vector<256x256xf32>
    tpu.vector_store %arg5[%c0_10, %c0_11], %12 {strides = array<i32>} : memref<256x256xf32, #tpu.memory_space<vmem>>, vector<256x256xf32>,
    %c0_i32_12 = arith.constant 0 : i32
    %14 = arith.cmpi eq, %arg1, %c0_i32_12 : i32
    %15 = arith.extui %14 : i1 to i32
    %c0_i32_13 = arith.constant 0 : i32
    %16 = arith.cmpi ne, %15, %c0_i32_13 : i32
    scf.if %16 {
      %c0_14 = arith.constant 0 : index
      %c0_15 = arith.constant 0 : index
      %17 = vector.load %arg5[%c0_14, %c0_15] : memref<256x256xf32, #tpu.memory_space<vmem>>, vector<256x256xf32>
      %cst_16 = arith.constant 0.000000e+00 : f32
      %18 = vector.broadcast %cst_16 : f32 to vector<256x256xf32>
      %19 = arith.maximumf %17, %18 : vector<256x256xf32>
      %20 = math.log1p %19 : vector<256x256xf32>
      %c0_17 = arith.constant 0 : index
      %c0_18 = arith.constant 0 : index
      %21 = vector.load %arg5[%c0_17, %c0_18] : memref<256x256xf32, #tpu.memory_space<vmem>>, vector<256x256xf32>
      tpu.vector_store %arg5[%c0_17, %c0_18], %20 {strides = array<i32>} : memref<256x256xf32, #tpu.memory_space<vmem>>, vector<256x256xf32>,
    } else {
    }
    return
  }
  func.func @transform_0(%arg0: i32, %arg1: i32) -> (i32, i32) {
    %c0_i32 = arith.constant 0 : i32
    %c0_i32_0 = arith.constant 0 : i32
    return %c0_i32, %arg1 : i32, i32
  }
  func.func @transform_1(%arg0: i32, %arg1: i32) -> (i32, i32, i32) {
    %c0_i32 = arith.constant 0 : i32
    %c0_i32_0 = arith.constant 0 : i32
    %c0_i32_1 = arith.constant 0 : i32
    return %c0_i32, %arg1, %c0_i32_0 : i32, i32, i32
  }
  func.func @transform_2(%arg0: i32, %arg1: i32) -> (i32, i32) {
    %c0_i32 = arith.constant 0 : i32
    %c0_i32_0 = arith.constant 0 : i32
    return %c0_i32, %arg0 : i32, i32
  }
  func.func @transform_3(%arg0: i32, %arg1: i32) -> (i32, i32) {
    %c0_i32 = arith.constant 0 : i32
    %c0_i32_0 = arith.constant 0 : i32
    return %c0_i32, %arg0 : i32, i32
  }
}

</mosaic_0001>

<bundles_post_ra>
// kernel: _simple_resize_impl.1
= control target key start
LH: loop header
LB: loop body
LE: loop exit
PB: predicated region body
PF: predicated region fallthrough
CT: control target
= control target key end

     0   :  { %8 = vsyncpa [#allocation3], 0  ;;  %s2543_s0 = inlined_call_operand.hbm [shape: bf16[256,16], index: 0, kind: input, shape index: {}]   ;;  %s2544_s1 = inlined_call_operand.hbm [shape: f32[4,16,16], index: 1, kind: input, shape index: {}]   ;;  %s2545_s2 = inlined_call_operand.vmem [shape: bf16[16,256], index: 2, kind: input, shape index: {}]   ;;  %s2546_s3 = inlined_call_operand.hbm [shape: f32[256,256], index: 3, kind: output, shape index: {}]  }
   0x1   :  { %9 = vsyncpa [#allocation6], 0 }
   0x2   :  { %10 = vsyncpa [#allocation4], 0  ;;  %s1777_s12 = smov [#allocation2]   ;;  %s1705_s16 = scalar_lea.hbm %s2543_s0, 2048 }
   0x3   :  { %s16_s13 = sshll.u32 %s1777_s12, 4  ;;  %p1706_p0 = scmp.ne.s32.totalorder %s2543_s0, %s1705_s16  ;;  %s17_s13 = int_to_ptr.vmem [resolvable:$true] %s16_s13 }
   0x4   :  { %p1709_p1 = scmp.lt.u32.totalorder %s1705_s16, %s2543_s0 }
   0x6   :  { %p1711_p2 = pnand %p1709_p1, %p1706_p0 }
   0x8   :  { %1714 = shalt.err (!%p1711_p2)
}
   0x9   :  { %s1715_s21 = scalar_lea.vmem %s17_s13, 2048  ;;  %p1720_p4 = scmp.lt.s32.totalorder %s17_s13, %s17_s13 }
   0xa   :  { %p1716_p3 = scmp.ne.s32.totalorder %s17_s13, %s1715_s21  ;;  %p1721_p5 = scmp.lt.s32.totalorder %s1715_s21, %s1715_s21 }
   0xc   :  { %p1722_p6 = por %p1721_p5, %p1720_p4 }
   0xe   :  { %p1723_p7 = pnand %p1722_p6, %p1716_p3 }
  0x10   :  { %1726 = shalt.err (!%p1723_p7)
}
  0x11   :  { %s1778_s22 = smov 64   ;;  %s1779_s23 = smov 4  }
  0x12   :  { %22 = dma.hbm_to_vmem [thread:$0]  %s2543_s0, 2048, %s17_s13, [#allocation3], %s1778_s22, %s1778_s22, %s1779_s23  }
  0x13   :  { %s1780_s26 = smov [#allocation5]   ;;  %s1727_s30 = scalar_lea.hbm %s2544_s1, 256 }
  0x14   :  { %s28_s27 = sshll.u32 %s1780_s26, 4  ;;  %p1728_p8 = scmp.ne.s32.totalorder %s2544_s1, %s1727_s30  ;;  %s29_s27 = int_to_ptr.vmem [resolvable:$true] %s28_s27 }
  0x15   :  { %s1729_s8 = scalar_lea.hbm %s2544_s1, 1024  ;;  %p1731_p10 = scmp.lt.u32.totalorder %s1727_s30, %s2544_s1 }
  0x16   :  { %p1730_p9 = scmp.lt.u32.totalorder %s1729_s8, %s1727_s30 }
  0x18   :  { %p1732_p11 = por %p1731_p10, %p1730_p9 }
  0x1a   :  { %p1733_p12 = pnand %p1732_p11, %p1728_p8 }
  0x1c   :  { %1736 = shalt.err (!%p1733_p12)
}
  0x1d   :  { %s1737_s0 = scalar_lea.vmem %s29_s27, 256  ;;  %p1742_p0 = scmp.lt.s32.totalorder %s29_s27, %s29_s27 }
  0x1e   :  { %p1738_p13 = scmp.ne.s32.totalorder %s29_s27, %s1737_s0  ;;  %p1743_p1 = scmp.lt.s32.totalorder %s1737_s0, %s1737_s0 }
  0x20   :  { %p1744_p2 = por %p1743_p1, %p1742_p0 }
  0x22   :  { %p1745_p3 = pnand %p1744_p2, %p1738_p13 }
  0x24   :  { %1748 = shalt.err (!%p1745_p3)
}
  0x25   :  { %s1781_s11 = smov 128   ;;  %s1782_s12 = smov 8  }
  0x26   :  { %34 = dma.hbm_to_vmem [thread:$0]  %s2544_s1, 256, %s29_s27, [#allocation6], %s1781_s11, %s1781_s11, %s1782_s12  }
  0x27   :  { %1771 = dma.done.wait [#allocation3], 2048  }
  0x28   :  { %1772 = vsyncadd [#allocation3], 4294965248 }
  0x29   :  { %1773 = dma.done.wait [#allocation6], 256  }
  0x2a   :  { %1774 = vsyncadd [#allocation6], 4294967040  ;;  %v1783_v0 = vmov 0   ;;  %v1558_v1 = vld [vmem:[%s2545_s2 + $0x4] ss:$8 sps:$4 sm:$0xff]   ;;  %vm127_vm0 = vcmask 130048  }
  0x2b   :  { %163 = vmatprep.mubr.bf16.mxu0 %v1783_v0  ;;  %502 = vmatprep.mubr.bf16.mxu1 %v1783_v0  ;;  %v1560_v2 = vld [vmem:[%s2545_s2] ss:$8 sps:$4 sm:$0xff]   ;;  %v1562_v13 = vld [vmem:[#allocation2 + $0x38] sm:$0xff]   ;;  %v1565_v16 = vld [vmem:[#allocation2 + $0x10] sm:$0xff]   ;;  %s1784_s1 = smov [#allocation7]  }
  0x2c   :  { %v112_v3 = vld [vmem:[#allocation5] sm:$0xff]  ;;  %v113_v4 = vld [vmem:[#allocation5 + $0x8] sm:$0xff]  ;;  %131 = vmatprep.subr.bf16.mxu0 %v1558_v1  ;;  %v1567_v18 = vld [vmem:[#allocation2 + $0x18] sm:$0xff]   ;;  %s1497_s2 = sshll.u32 %s1784_s1, 4  ;;  %s1498_s2 = int_to_ptr.vmem [resolvable:$true] %s1497_s2 }
  0x2d   :  { %v114_v5 = vpack.c.bf16 %v113_v4, %v112_v3  ;;  %132 = vmatpush1.bf16.msra.mxu0 %v1560_v2  ;;  %v1561_v12 = vld [vmem:[#allocation2] sm:$0xff]   ;;  %v1563_v14 = vld [vmem:[#allocation2 + $0x8] sm:$0xff]   ;;  %v1568_v19 = vld [vmem:[#allocation2 + $0x50] sm:$0xff]   ;;  %s1749_s19 = scalar_lea.vmem %s1498_s2, 8192  ;;  %p1754_p5 = scmp.lt.s32.totalorder %s1498_s2, %s1498_s2 }
  0x2e   :  { %v1564_v15 = vld [vmem:[#allocation2 + $0x40] sm:$0xff]   ;;  %v1566_v17 = vld [vmem:[#allocation2 + $0x48] sm:$0xff]   ;;  %v1570_v21 = vld [vmem:[#allocation2 + $0x58] sm:$0xff]   ;;  %p1750_p4 = scmp.ne.s32.totalorder %s1498_s2, %s1749_s19  ;;  %p1755_p6 = scmp.lt.s32.totalorder %s1749_s19, %s1749_s19 }
  0x2f   :  { %v1569_v20 = vld [vmem:[#allocation2 + $0x20] sm:$0xff]   ;;  %v1571_v22 = vld [vmem:[#allocation2 + $0x28] sm:$0xff]   ;;  %v1573_v24 = vld [vmem:[#allocation2 + $0x30] sm:$0xff]  }
  0x30   :  { %1512 = vmatmul.mubr.msk.bf16.vlgmr.msra.gmra.mrb[0].mxu0 %vm127_vm0, %v114_v5  ;;  %v1572_v23 = vld [vmem:[#allocation2 + $0x60] sm:$0xff]   ;;  %v1574_v25 = vld [vmem:[#allocation2 + $0x68] sm:$0xff]   ;;  %v1575_v26 = vld [vmem:[#allocation2 + $0x70] sm:$0xff]   ;;  %p1756_p7 = por %p1755_p6, %p1754_p5 }
  0x31   :  { %432 = vmatprep.mubr.bf16.mxu0 %v1783_v0  ;;  %v1576_v27 = vld [vmem:[#allocation2 + $0x78] sm:$0xff]  }
  0x32   :  { %p1757_p8 = pnand %p1756_p7, %p1750_p4 }
 0x103   :  { %v165_v6 = vpop.f32.mrb[0].mxu0 }
 0x104   :  { %v167_v7 = vpop.f32.mrb[1].mxu0 }
 0x105   :  { %v169_v8 = vpop.f32.mrb[2].mxu0 }
 0x106   :  { %v270_v9 = vpack.c.bf16 %v169_v8, %v165_v6  ;;  %v171_v10 = vpop.f32.mrb[3].mxu0 }
 0x107   :  { %v271_v11 = vpack.c.bf16 %v171_v10, %v167_v7 }
 0x109   :  { %400 = vmatprep.subr.bf16.mxu0 %v271_v11  ;;  %1545 = vmatprep.subr.bf16.mxu1 %v271_v11 }
 0x10a   :  { %401 = vmatpush1.bf16.msra.mxu0 %v270_v9  ;;  %1546 = vmatpush1.bf16.msra.mxu1 %v270_v9 }
 0x10d   :  { %1529 = vmatmul.mubr.msk.bf16.vlgmr.msra.gmra.mrb[4].mxu0 %vm127_vm0, %v1561_v12  ;;  %1536 = vmatmul.mubr.msk.bf16.vlgmr.msra.gmra.mrb[0].mxu1 %vm127_vm0, %v1562_v13 }
 0x10e   :  { %442 = vmatprep.mubr.bf16.mxu0 %v1783_v0  ;;  %512 = vmatprep.mubr.bf16.mxu1 %v1783_v0 }
 0x115   :  { %1530 = vmatmul.mubr.msk.bf16.gmra.mrb[8].mxu0 %vm127_vm0, %v1563_v14  ;;  %1537 = vmatmul.mubr.msk.bf16.gmra.mrb[4].mxu1 %vm127_vm0, %v1564_v15 }
 0x116   :  { %452 = vmatprep.mubr.bf16.mxu0 %v1783_v0  ;;  %522 = vmatprep.mubr.bf16.mxu1 %v1783_v0 }
 0x11d   :  { %1531 = vmatmul.mubr.msk.bf16.gmra.mrb[12].mxu0 %vm127_vm0, %v1565_v16  ;;  %1538 = vmatmul.mubr.msk.bf16.gmra.mrb[8].mxu1 %vm127_vm0, %v1566_v17 }
 0x11e   :  { %462 = vmatprep.mubr.bf16.mxu0 %v1783_v0  ;;  %532 = vmatprep.mubr.bf16.mxu1 %v1783_v0 }
 0x125   :  { %1532 = vmatmul.mubr.msk.bf16.gmra.mrb[16].mxu0 %vm127_vm0, %v1567_v18  ;;  %1539 = vmatmul.mubr.msk.bf16.gmra.mrb[12].mxu1 %vm127_vm0, %v1568_v19 }
 0x126   :  { %472 = vmatprep.mubr.bf16.mxu0 %v1783_v0  ;;  %542 = vmatprep.mubr.bf16.mxu1 %v1783_v0 }
 0x12d   :  { %1533 = vmatmul.mubr.msk.bf16.gmra.mrb[20].mxu0 %vm127_vm0, %v1569_v20  ;;  %1540 = vmatmul.mubr.msk.bf16.gmra.mrb[16].mxu1 %vm127_vm0, %v1570_v21 }
 0x12e   :  { %482 = vmatprep.mubr.bf16.mxu0 %v1783_v0  ;;  %552 = vmatprep.mubr.bf16.mxu1 %v1783_v0 }
 0x135   :  { %1534 = vmatmul.mubr.msk.bf16.gmra.mrb[24].mxu0 %vm127_vm0, %v1571_v22  ;;  %1541 = vmatmul.mubr.msk.bf16.gmra.mrb[20].mxu1 %vm127_vm0, %v1572_v23 }
 0x136   :  { %492 = vmatprep.mubr.bf16.mxu0 %v1783_v0  ;;  %562 = vmatprep.mubr.bf16.mxu1 %v1783_v0 }
 0x13d   :  { %1535 = vmatmul.mubr.msk.bf16.gmra.mrb[28].mxu0 %vm127_vm0, %v1573_v24  ;;  %1542 = vmatmul.mubr.msk.bf16.gmra.mrb[24].mxu1 %vm127_vm0, %v1574_v25 }
 0x13e   :  { %572 = vmatprep.mubr.bf16.mxu1 %v1783_v0 }
 0x145   :  { %1543 = vmatmul.mubr.msk.bf16.gmra.mrb[28].mxu1 %vm127_vm0, %v1575_v26 }
 0x146   :  { %582 = vmatprep.mubr.bf16.mxu1 %v1783_v0 }
 0x14d   :  { %1544 = vmatmul.mubr.msk.bf16.gmra.mrb[32].mxu1 %vm127_vm0, %v1576_v27 }
 0x1e0   :  { %v434_v28 = vpop.f32.mrb[4].mxu0  ;;  %v504_v29 = vpop.f32.mrb[0].mxu1 }
 0x1e1   :  { %v436_v30 = vpop.f32.mrb[5].mxu0  ;;  %v506_v31 = vpop.f32.mrb[1].mxu1  ;;  %v788_v34 = vmax.f32 %v434_v28, 0.0  ;;  %v816_v35 = vmax.f32 %v504_v29, 0.0 }
 0x1e2   :  { %v438_v32 = vpop.f32.mrb[6].mxu0  ;;  %v508_v33 = vpop.f32.mrb[2].mxu1  ;;  %v789_v38 = vmax.f32 %v436_v30, 0.0  ;;  %v817_v42 = vmax.f32 %v506_v31, 0.0 }
 0x1e3   :  { %v440_v36 = vpop.f32.mrb[7].mxu0  ;;  %v510_v37 = vpop.f32.mrb[3].mxu1  ;;  %v852_v39 = vadd.f32 1.0, %v788_v34  ;;  %v855_v40 = vmul.f32 -0.5, %v788_v34  ;;  %v1104_v41 = vadd.f32 1.0, %v816_v35  ;;  %v1107_v43 = vmul.f32 -0.5, %v816_v35 }
 0x1e4   :  { %v861_v44 = vadd.f32 1.0, %v789_v38  ;;  %v858_v45 = vand.u32 2147483647, %v788_v34  ;;  %v1110_v47 = vand.u32 2147483647, %v816_v35  ;;  %v864_v48 = vmul.f32 -0.5, %v789_v38 }
 0x1e5   :  { %1577 = vlog2.f32 %v852_v39  ;;  %v856_v46 = vadd.f32 1.0, %v855_v40  ;;  %v867_v51 = vand.u32 2147483647, %v789_v38  ;;  %v1113_v52 = vadd.f32 1.0, %v817_v42 }
 0x1e6   :  { %1579 = vlog2.f32 %v1104_v41  ;;  %v1108_v55 = vadd.f32 1.0, %v1107_v43  ;;  %v1116_v56 = vmul.f32 -0.5, %v817_v42  ;;  %v1119_v57 = vand.u32 2147483647, %v817_v42 }
 0x1e7   :  { %1581 = vlog2.f32 %v861_v44  ;;  %v790_v60 = vmax.f32 %v438_v32, 0.0  ;;  %v818_v61 = vmax.f32 %v508_v33, 0.0  ;;  %v1884_v62 = vmax.f32 %v440_v36, 0.0 }
 0x1e8   :  { %v444_v49 = vpop.f32.mrb[8].mxu0  ;;  %v1874_v50 = vpop.f32.mrb[4].mxu1  ;;  %1583 = vlog2.f32 %v1113_v52  ;;  %v857_v1 = vmul.f32 %v856_v46, %v788_v34  ;;  %vm1890_vm1 = vcmp.lt.f32.partialorder %v858_v45, 0.0004427343  ;;  %vm1894_vm2 = vcmp.lt.f32.partialorder %v1110_v47, 0.0004427343 }
 0x1e9   :  { %v1876_v53 = vpop.f32.mrb[9].mxu0  ;;  %v1878_v54 = vpop.f32.mrb[5].mxu1  ;;  %v865_v4 = vadd.f32 1.0, %v864_v48  ;;  %v870_v5 = vadd.f32 1.0, %v790_v60  ;;  %v876_v6 = vand.u32 2147483647, %v790_v60  ;;  %v1109_v13 = vmul.f32 %v1108_v55, %v816_v35 }
 0x1ea   :  { %v1880_v58 = vpop.f32.mrb[10].mxu0  ;;  %v1882_v59 = vpop.f32.mrb[6].mxu1  ;;  %v1122_v7 = vadd.f32 1.0, %v818_v61  ;;  %v1898_v8 = vmax.f32 %v510_v37, 0.0  ;;  %vm1900_vm3 = vcmp.lt.f32.partialorder %v867_v51, 0.0004427343 }
 0x1eb   :  { %v1886_v63 = vpop.f32.mrb[11].mxu0  ;;  %v1888_v0 = vpop.f32.mrb[7].mxu1  ;;  %v1117_v10 = vadd.f32 1.0, %v1116_v56  ;;  %v873_v11 = vmul.f32 -0.5, %v790_v60  ;;  %v879_v12 = vadd.f32 1.0, %v1884_v62  ;;  %1585 = vlog2.f32 %v870_v5 }
 0x1ec   :  { %vm1905_vm4 = vcmp.lt.f32.partialorder %v1119_v57, 0.0004427343  ;;  %v1125_v15 = vmul.f32 -0.5, %v818_v61  ;;  %1587 = vlog2.f32 %v1122_v7  ;;  %v1128_v16 = vand.u32 2147483647, %v818_v61 }
 0x1ed   :  { %v882_v17 = vmul.f32 -0.5, %v1884_v62  ;;  %v866_v20 = vmul.f32 %v865_v4, %v789_v38  ;;  %vm1912_vm5 = vcmp.lt.f32.partialorder %v876_v6, 0.0004427343  ;;  %1589 = vlog2.f32 %v879_v12 }
 0x1ee   :  { %v1131_v22 = vadd.f32 1.0, %v1898_v8  ;;  %v1118_v27 = vmul.f32 %v1117_v10, %v817_v42  ;;  %v874_v28 = vadd.f32 1.0, %v873_v11  ;;  %v885_v29 = vand.u32 2147483647, %v1884_v62 }
 0x1ef   :  { %v1578_v19 = vpop.eup %1577  ;;  %v1126_v33 = vadd.f32 1.0, %v1125_v15  ;;  %v1134_v34 = vmul.f32 -0.5, %v1898_v8  ;;  %v883_v39 = vadd.f32 1.0, %v882_v17  ;;  %v1931_v40 = vmax.f32 %v444_v49, 0.0 }
 0x1f0   :  { %v1910_v18 = vpop.f32.mrb[12].mxu0  ;;  %v1917_v23 = vpop.f32.mrb[8].mxu1  ;;  %v854_v26 = vmul.f32 0.6931472, %v1578_v19  ;;  %1591 = vlog2.f32 %v1131_v22  ;;  %vm1939_vm6 = vcmp.lt.f32.partialorder %v1128_v16, 0.0004427343  ;;  %v875_v48 = vmul.f32 %v874_v28, %v790_v60 }
 0x1f1   :  { %v1919_v24 = vpop.f32.mrb[13].mxu0  ;;  %v1580_v25 = vpop.eup %1579  ;;  %v888_v49 = vadd.f32 1.0, %v1931_v40  ;;  %v1127_v51 = vmul.f32 %v1126_v33, %v818_v61  ;;  %v1135_v52 = vadd.f32 1.0, %v1134_v34  ;;  %v820_v55 = vmax.f32 %v1874_v50, 0.0 }
 0x1f2   :  { %v1922_v30 = vpop.f32.mrb[9].mxu1  ;;  %v1582_v31 = vpop.eup %1581  ;;  %v1106_v32 = vmul.f32 0.6931472, %v1580_v25  ;;  %v860_v37 = vsel %vm1890_vm1, %v857_v1, %v854_v26  ;;  %v1948_v56 = vmax.f32 %v1876_v53, 0.0  ;;  %v884_v1 = vmul.f32 %v883_v39, %v1884_v62 }
 0x1f3   :  { %v1925_v35 = vpop.f32.mrb[14].mxu0  ;;  %v1927_v36 = vpop.f32.mrb[10].mxu1  ;;  %v863_v38 = vmul.f32 0.6931472, %v1582_v31  ;;  %1428 = vst [vmem:[#allocation7] sm:$0xff] %v860_v37  ;;  %1593 = vlog2.f32 %v888_v49  ;;  %v891_v53 = vmul.f32 -0.5, %v1931_v40  ;;  %v1136_v12 = vmul.f32 %v1135_v52, %v1898_v8 }
 0x1f4   :  { %v1933_v41 = vpop.f32.mrb[15].mxu0  ;;  %v1935_v42 = vpop.f32.mrb[11].mxu1  ;;  %v1112_v44 = vsel %vm1894_vm2, %v1109_v13, %v1106_v32  ;;  %vm1953_vm7 = vcmp.lt.f32.partialorder %v885_v29, 0.0004427343  ;;  %v1137_v50 = vand.u32 2147483647, %v1898_v8 }
 0x1f5   :  { %v1584_v43 = vpop.eup %1583  ;;  %1456 = vst [vmem:[#allocation7 + $0xe0] sm:$0xff] %v1112_v44  ;;  %v869_v46 = vsel %vm1900_vm3, %v866_v20, %v863_v38  ;;  %v1140_v4 = vadd.f32 1.0, %v820_v55  ;;  %v1143_v5 = vmul.f32 -0.5, %v820_v55  ;;  %v897_v9 = vadd.f32 1.0, %v1948_v56 }
 0x1f6   :  { %v1115_v47 = vmul.f32 0.6931472, %v1584_v43  ;;  %1429 = vst [vmem:[#allocation7 + $0x8] sm:$0xff] %v869_v46  ;;  %v1586_v61 = vpop.eup %1585  ;;  %v894_v13 = vand.u32 2147483647, %v1931_v40  ;;  %v900_v19 = vmul.f32 -0.5, %v1948_v56 }
 0x1f7   :  { %v1588_v62 = vpop.eup %1587  ;;  %v872_v7 = vmul.f32 0.6931472, %v1586_v61  ;;  %1595 = vlog2.f32 %v1140_v4  ;;  %v892_v26 = vadd.f32 1.0, %v891_v53  ;;  %v1146_v28 = vand.u32 2147483647, %v820_v55 }
 0x1f8   :  { %v1121_v57 = vsel %vm1905_vm4, %v1118_v27, %v1115_v47  ;;  %v1957_v60 = vpop.f32.mrb[16].mxu0  ;;  %v1959_v3 = vpop.f32.mrb[12].mxu1  ;;  %v1124_v11 = vmul.f32 0.6931472, %v1588_v62  ;;  %1597 = vlog2.f32 %v897_v9  ;;  %v1144_v27 = vadd.f32 1.0, %v1143_v5 }
 0x1f9   :  { %1457 = vst [vmem:[#allocation7 + $0xe8] sm:$0xff] %v1121_v57  ;;  %v1963_v6 = vpop.f32.mrb[17].mxu0  ;;  %v1590_v10 = vpop.eup %1589  ;;  %v878_v16 = vsel %vm1912_vm5, %v875_v48, %v872_v7  ;;  %v1986_v32 = vmax.f32 %v1878_v54, 0.0  ;;  %v1989_v33 = vmax.f32 %v1880_v58, 0.0  ;;  %vm1138_vm8 = vcmp.lt.f32.partialorder %v1137_v50, 0.0004427343 }
 0x1fa   :  { %v1968_v14 = vpop.f32.mrb[13].mxu1  ;;  %v1970_v15 = vpop.f32.mrb[18].mxu0  ;;  %v881_v17 = vmul.f32 0.6931472, %v1590_v10  ;;  %1430 = vst [vmem:[#allocation7 + $0x10] sm:$0xff] %v878_v16  ;;  %v1130_v8 = vsel %vm1939_vm6, %v1127_v51, %v1124_v11  ;;  %v901_v39 = vadd.f32 1.0, %v900_v19  ;;  %v893_v54 = vmul.f32 %v892_v26, %v1931_v40 }
 0x1fb   :  { %v1975_v20 = vpop.f32.mrb[14].mxu1  ;;  %v1977_v22 = vpop.f32.mrb[19].mxu0  ;;  %1458 = vst [vmem:[#allocation7 + $0xf0] sm:$0xff] %v1130_v8  ;;  %v903_v34 = vand.u32 2147483647, %v1948_v56  ;;  %v1149_v43 = vadd.f32 1.0, %v1986_v32  ;;  %v1145_v51 = vmul.f32 %v1144_v27, %v820_v55 }
 0x1fc   :  { %v1592_v25 = vpop.eup %1591  ;;  %v1981_v29 = vpop.f32.mrb[15].mxu1  ;;  %v887_v21 = vsel %vm1953_vm7, %v884_v1, %v881_v17  ;;  %vm1992_vm9 = vcmp.lt.f32.partialorder %v894_v13, 0.0004427343  ;;  %vm2002_vm10 = vcmp.lt.f32.partialorder %v1146_v28, 0.0004427343  ;;  %v906_v46 = vadd.f32 1.0, %v1989_v33 }
 0x1fd   :  { %v1133_v31 = vmul.f32 0.6931472, %v1592_v25  ;;  %1431 = vst [vmem:[#allocation7 + $0x18] sm:$0xff] %v887_v21  ;;  %v822_v47 = vmax.f32 %v1882_v59, 0.0  ;;  %v1594_v49 = vpop.eup %1593  ;;  %1599 = vlog2.f32 %v1149_v43  ;;  %v1152_v52 = vmul.f32 -0.5, %v1986_v32 }
 0x1fe   :  { %v2012_v57 = vmax.f32 %v1886_v63, 0.0  ;;  %v890_v2 = vmul.f32 0.6931472, %v1594_v49  ;;  %vm2018_vm11 = vcmp.lt.f32.partialorder %v903_v34, 0.0004427343  ;;  %1601 = vlog2.f32 %v906_v46 }
 0x1ff   :  { %v1139_v37 = vsel %vm1138_vm8, %v1136_v12, %v1133_v31  ;;  %v909_v59 = vmul.f32 -0.5, %v1989_v33  ;;  %v902_v55 = vmul.f32 %v901_v39, %v1948_v56  ;;  %v1155_v53 = vand.u32 2147483647, %v1986_v32 }
 0x200   :  { %v1997_v44 = vpop.f32.mrb[20].mxu0  ;;  %v1999_v45 = vpop.f32.mrb[16].mxu1  ;;  %1459 = vst [vmem:[#allocation7 + $0xf8] sm:$0xff] %v1139_v37  ;;  %v1158_v63 = vadd.f32 1.0, %v822_v47  ;;  %v1161_v4 = vmul.f32 -0.5, %v822_v47  ;;  %v896_v9 = vsel %vm1992_vm9, %v893_v54, %v890_v2  ;;  %v915_v11 = vadd.f32 1.0, %v2012_v57 }
 0x201   :  { %v2008_v48 = vpop.f32.mrb[21].mxu0  ;;  %v2014_v1 = vpop.f32.mrb[17].mxu1  ;;  %v912_v10 = vand.u32 2147483647, %v1989_v33  ;;  %v918_v12 = vmul.f32 -0.5, %v2012_v57  ;;  %1432 = vst [vmem:[#allocation7 + $0x20] sm:$0xff] %v896_v9 }
 0x202   :  { %v2016_v40 = vpop.f32.mrb[22].mxu0  ;;  %v2023_v50 = vpop.f32.mrb[18].mxu1  ;;  %v1153_v16 = vadd.f32 1.0, %v1152_v52  ;;  %1603 = vlog2.f32 %v1158_v63  ;;  %v1164_v17 = vand.u32 2147483647, %v822_v47  ;;  %v910_v25 = vadd.f32 1.0, %v909_v59 }
 0x203   :  { %v2027_v5 = vpop.f32.mrb[23].mxu0  ;;  %v2029_v62 = vpop.f32.mrb[19].mxu1  ;;  %v1162_v8 = vadd.f32 1.0, %v1161_v4  ;;  %1605 = vlog2.f32 %v915_v11  ;;  %v919_v27 = vadd.f32 1.0, %v918_v12  ;;  %vm2044_vm12 = vcmp.lt.f32.partialorder %v1155_v53, 0.0004427343 }
 0x204   :  { %v1596_v7 = vpop.eup %1595  ;;  %vm2048_vm13 = vcmp.lt.f32.partialorder %v912_v10, 0.0004427343  ;;  %vm2056_vm14 = vcmp.lt.f32.partialorder %v1164_v17, 0.0004427343  ;;  %v2061_v54 = vmax.f32 %v1888_v0, 0.0  ;;  %v2064_v58 = vmax.f32 %v1910_v18, 0.0 }
 0x205   :  { %v1598_v13 = vpop.eup %1597  ;;  %v1142_v56 = vmul.f32 0.6931472, %v1596_v7  ;;  %v911_v52 = vmul.f32 %v910_v25, %v1989_v33  ;;  %v921_v2 = vand.u32 2147483647, %v2012_v57  ;;  %v2074_v61 = vmax.f32 %v1917_v23, 0.0 }
 0x206   :  { %v899_v19 = vmul.f32 0.6931472, %v1598_v13  ;;  %v1163_v18 = vmul.f32 %v1162_v8, %v822_v47  ;;  %v920_v53 = vmul.f32 %v919_v27, %v2012_v57  ;;  %v1167_v63 = vadd.f32 1.0, %v2061_v54 }
 0x207   :  { %v1148_v26 = vsel %vm2002_vm10, %v1145_v51, %v1142_v56  ;;  %v1154_v51 = vmul.f32 %v1153_v16, %v1986_v32  ;;  %v924_v4 = vadd.f32 1.0, %v2064_v58  ;;  %v1176_v33 = vadd.f32 1.0, %v2074_v61 }
 0x208   :  { %v2038_v28 = vpop.f32.mrb[24].mxu0  ;;  %v2040_v21 = vpop.f32.mrb[20].mxu1  ;;  %1460 = vst [vmem:[#allocation7 + $0x100] sm:$0xff] %v1148_v26  ;;  %v905_v31 = vsel %vm2018_vm11, %v902_v55, %v899_v19  ;;  %1607 = vlog2.f32 %v1167_v63  ;;  %v1170_v23 = vmul.f32 -0.5, %v2061_v54  ;;  %vm2087_vm15 = vcmp.lt.f32.partialorder %v921_v2, 0.0004427343 }
 0x209   :  { %v2052_v38 = vpop.f32.mrb[25].mxu0  ;;  %v2054_v39 = vpop.f32.mrb[21].mxu1  ;;  %1433 = vst [vmem:[#allocation7 + $0x28] sm:$0xff] %v905_v31  ;;  %1609 = vlog2.f32 %v924_v4  ;;  %v927_v47 = vmul.f32 -0.5, %v2064_v58  ;;  %v1173_v13 = vand.u32 2147483647, %v2061_v54 }
 0x20a   :  { %v2066_v46 = vpop.f32.mrb[26].mxu0  ;;  %v2068_v49 = vpop.f32.mrb[22].mxu1  ;;  %v930_v56 = vand.u32 2147483647, %v2064_v58  ;;  %1611 = vlog2.f32 %v1176_v33  ;;  %v1179_v8 = vmul.f32 -0.5, %v2074_v61  ;;  %v797_v26 = vmax.f32 %v1919_v24, 0.0 }
 0x20b   :  { %v2076_v59 = vpop.f32.mrb[27].mxu0  ;;  %v2078_v0 = vpop.f32.mrb[23].mxu1  ;;  %v1171_v34 = vadd.f32 1.0, %v1170_v23  ;;  %v825_v37 = vmax.f32 %v1922_v30, 0.0  ;;  %v1182_v63 = vand.u32 2147483647, %v2074_v61 }
 0x20c   :  { %v1600_v55 = vpop.eup %1599  ;;  %v933_v4 = vadd.f32 1.0, %v797_v26  ;;  %vm2119_vm0 = vcmp.lt.f32.partialorder %v1173_v13, 0.0004427343  ;;  %v939_v23 = vand.u32 2147483647, %v797_v26 }
 0x20d   :  { %v1602_v32 = vpop.eup %1601  ;;  %v1151_v7 = vmul.f32 0.6931472, %v1600_v55  ;;  %v928_v55 = vadd.f32 1.0, %v927_v47  ;;  %vm2127_vm1 = vcmp.lt.f32.partialorder %v930_v56, 0.0004427343  ;;  %v1172_v47 = vmul.f32 %v1171_v34, %v2061_v54 }
 0x20e   :  { %v908_v9 = vmul.f32 0.6931472, %v1602_v32  ;;  %v1604_v57 = vpop.eup %1603  ;;  %1613 = vlog2.f32 %v933_v4  ;;  %vm2134_vm2 = vcmp.lt.f32.partialorder %v1182_v63, 0.0004427343  ;;  %v1191_v13 = vand.u32 2147483647, %v825_v37 }
 0x20f   :  { %v1157_v10 = vsel %vm2044_vm12, %v1154_v51, %v1151_v7  ;;  %v1606_v19 = vpop.eup %1605  ;;  %v1160_v25 = vmul.f32 0.6931472, %v1604_v57  ;;  %v2106_v51 = vmax.f32 %v1925_v35, 0.0  ;;  %v1185_v7 = vadd.f32 1.0, %v825_v37 }
 0x210   :  { %1461 = vst [vmem:[#allocation7 + $0x108] sm:$0xff] %v1157_v10  ;;  %v914_v12 = vsel %vm2048_vm13, %v911_v52, %v908_v9  ;;  %v2096_v16 = vpop.f32.mrb[28].mxu0  ;;  %v2098_v17 = vpop.f32.mrb[24].mxu1  ;;  %v917_v31 = vmul.f32 0.6931472, %v1606_v19  ;;  %v936_v9 = vmul.f32 -0.5, %v797_v26  ;;  %v929_v57 = vmul.f32 %v928_v55, %v2064_v58 }
 0x211   :  { %1434 = vst [vmem:[#allocation7 + $0x30] sm:$0xff] %v914_v12  ;;  %v2102_v27 = vpop.f32.mrb[29].mxu0  ;;  %v2108_v52 = vpop.f32.mrb[25].mxu1  ;;  %v1166_v2 = vsel %vm2056_vm14, %v1163_v18, %v1160_v25  ;;  %v1180_v18 = vadd.f32 1.0, %v1179_v8  ;;  %1615 = vlog2.f32 %v1185_v7  ;;  %v942_v11 = vadd.f32 1.0, %v2106_v51 }
 0x212   :  { %v2113_v32 = vpop.f32.mrb[30].mxu0  ;;  %v2115_v24 = vpop.f32.mrb[26].mxu1  ;;  %1462 = vst [vmem:[#allocation7 + $0x110] sm:$0xff] %v1166_v2  ;;  %v923_v30 = vsel %vm2087_vm15, %v920_v53, %v917_v31  ;;  %v1188_v53 = vmul.f32 -0.5, %v825_v37  ;;  %v945_v56 = vmul.f32 -0.5, %v2106_v51  ;;  %v2140_v25 = vmax.f32 %v1927_v36, 0.0 }
 0x213   :  { %v2123_v33 = vpop.f32.mrb[31].mxu0  ;;  %v2125_v43 = vpop.f32.mrb[27].mxu1  ;;  %1435 = vst [vmem:[#allocation7 + $0x38] sm:$0xff] %v923_v30  ;;  %1617 = vlog2.f32 %v942_v11  ;;  %v2143_v8 = vmax.f32 %v1933_v41, 0.0  ;;  %v1181_v58 = vmul.f32 %v1180_v18, %v2074_v61  ;;  %v937_v2 = vadd.f32 1.0, %v936_v9 }
 0x214   :  { %v1608_v19 = vpop.eup %1607  ;;  %vm2148_vm3 = vcmp.lt.f32.partialorder %v939_v23, 0.0004427343  ;;  %v1189_v36 = vadd.f32 1.0, %v1188_v53  ;;  %v1194_v7 = vadd.f32 1.0, %v2140_v25  ;;  %v948_v61 = vand.u32 2147483647, %v2106_v51 }
 0x215   :  { %v1610_v54 = vpop.eup %1609  ;;  %v1169_v34 = vmul.f32 0.6931472, %v1608_v19  ;;  %v951_v18 = vadd.f32 1.0, %v2143_v8  ;;  %v1197_v53 = vmul.f32 -0.5, %v2140_v25  ;;  %vm2169_vm4 = vcmp.lt.f32.partialorder %v1191_v13, 0.0004427343 }
 0x216   :  { %v1612_v4 = vpop.eup %1611  ;;  %v926_v30 = vmul.f32 0.6931472, %v1610_v54  ;;  %v946_v54 = vadd.f32 1.0, %v945_v56  ;;  %1619 = vlog2.f32 %v1194_v7  ;;  %v827_v10 = vmax.f32 %v1935_v42, 0.0 }
 0x217   :  { %v1175_v11 = vsel %vm2119_vm0, %v1172_v47, %v1169_v34  ;;  %v1178_v19 = vmul.f32 0.6931472, %v1612_v4  ;;  %v938_v47 = vmul.f32 %v937_v2, %v797_v26  ;;  %1621 = vlog2.f32 %v951_v18 }
 0x218   :  { %v2145_v31 = vpop.f32.mrb[28].mxu1  ;;  %1463 = vst [vmem:[#allocation7 + $0x118] sm:$0xff] %v1175_v11  ;;  %v932_v23 = vsel %vm2127_vm1, %v929_v57, %v926_v30  ;;  %v954_v34 = vmul.f32 -0.5, %v2143_v8  ;;  %v1190_v4 = vmul.f32 %v1189_v36, %v825_v37  ;;  %v1614_v57 = vpop.eup %1613  ;;  %vm2174_vm5 = vcmp.lt.f32.partialorder %v948_v61, 0.0004427343 }
 0x219   :  { %v2152_v63 = vpop.f32.mrb[29].mxu1  ;;  %1436 = vst [vmem:[#allocation7 + $0x40] sm:$0xff] %v932_v23  ;;  %v1184_v35 = vsel %vm2134_vm2, %v1181_v58, %v1178_v19  ;;  %v1200_v12 = vand.u32 2147483647, %v2140_v25  ;;  %v935_v26 = vmul.f32 0.6931472, %v1614_v57  ;;  %v947_v2 = vmul.f32 %v946_v54, %v2106_v51 }
 0x21a   :  { %v2155_v41 = vpop.f32.mrb[30].mxu1  ;;  %1464 = vst [vmem:[#allocation7 + $0x120] sm:$0xff] %v1184_v35  ;;  %v1198_v30 = vadd.f32 1.0, %v1197_v53  ;;  %v1203_v7 = vadd.f32 1.0, %v827_v10  ;;  %v955_v36 = vadd.f32 1.0, %v954_v34  ;;  %v800_v11 = vmax.f32 %v1957_v60, 0.0 }
 0x21b   :  { %v2161_v9 = vpop.f32.mrb[31].mxu1  ;;  %v1616_v58 = vpop.eup %1615  ;;  %v828_v42 = vmax.f32 %v1959_v3, 0.0  ;;  %v941_v61 = vsel %vm2148_vm3, %v938_v47, %v935_v26  ;;  %v1206_v18 = vmul.f32 -0.5, %v827_v10  ;;  %v2187_v23 = vmax.f32 %v1963_v6, 0.0 }
 0x21c   :  { %2583 = vst [vmem:[#allocation11_spill] sm:$0xff] %v2161_v9  ;;  %v1187_v13 = vmul.f32 0.6931472, %v1616_v58  ;;  %1623 = vlog2.f32 %v1203_v7  ;;  %1437 = vst [vmem:[#allocation7 + $0x48] sm:$0xff] %v941_v61  ;;  %v957_v60 = vand.u32 2147483647, %v2143_v8  ;;  %v956_v58 = vmul.f32 %v955_v36, %v2143_v8 }
 0x21d   :  { %v1618_v19 = vpop.eup %1617  ;;  %v960_v35 = vadd.f32 1.0, %v800_v11  ;;  %vm2196_vm6 = vcmp.lt.f32.partialorder %v1200_v12, 0.0004427343  ;;  %v963_v47 = vmul.f32 -0.5, %v800_v11  ;;  %v1212_v6 = vadd.f32 1.0, %v828_v42 }
 0x21e   :  { %v1193_v54 = vsel %vm2169_vm4, %v1190_v4, %v1187_v13  ;;  %v944_v53 = vmul.f32 0.6931472, %v1618_v19  ;;  %v1209_v9 = vand.u32 2147483647, %v827_v10  ;;  %v1207_v26 = vadd.f32 1.0, %v1206_v18 }
 0x21f   :  { %1465 = vst [vmem:[#allocation7 + $0x128] sm:$0xff] %v1193_v54  ;;  %1625 = vlog2.f32 %v960_v35  ;;  %v969_v12 = vadd.f32 1.0, %v2187_v23  ;;  %v1199_v19 = vmul.f32 %v1198_v30, %v2140_v25  ;;  %vm958_vm7 = vcmp.lt.f32.partialorder %v957_v60, 0.0004427343 }
 0x220   :  { %v2180_v37 = vpop.f32.mrb[32].mxu1  ;;  %v950_v57 = vsel %vm2174_vm5, %v947_v2, %v944_v53  ;;  %v1620_v4 = vpop.eup %1619  ;;  %1627 = vlog2.f32 %v1212_v6  ;;  %v1215_v61 = vmul.f32 -0.5, %v828_v42  ;;  %v966_v56 = vand.u32 2147483647, %v800_v11 }
 0x221   :  { %v2189_v51 = vpop.f32.mrb[33].mxu1  ;;  %1438 = vst [vmem:[#allocation7 + $0x50] sm:$0xff] %v950_v57  ;;  %v1622_v7 = vpop.eup %1621  ;;  %v1196_v13 = vmul.f32 0.6931472, %v1620_v4  ;;  %1629 = vlog2.f32 %v969_v12  ;;  %vm2209_vm8 = vcmp.lt.f32.partialorder %v1209_v9, 0.0004427343  ;;  %v1208_v25 = vmul.f32 %v1207_v26, %v827_v10 }
 0x222   :  { %v2194_v3 = vpop.f32.mrb[34].mxu1  ;;  %v953_v54 = vmul.f32 0.6931472, %v1622_v7  ;;  %v972_v8 = vmul.f32 -0.5, %v2187_v23  ;;  %v829_v36 = vmax.f32 %v1968_v14, 0.0  ;;  %v1216_v30 = vadd.f32 1.0, %v1215_v61 }
 0x223   :  { %v2200_v34 = vpop.f32.mrb[35].mxu1  ;;  %v1202_v2 = vsel %vm2196_vm6, %v1199_v19, %v1196_v13  ;;  %v1218_v60 = vand.u32 2147483647, %v828_v42  ;;  %v975_v35 = vand.u32 2147483647, %v2187_v23  ;;  %v802_v9 = vmax.f32 %v1970_v15, 0.0 }
 0x224   :  { %2590 = vst [vmem:[#allocation12_spill] sm:$0xff] %v2200_v34  ;;  %v964_v34 = vadd.f32 1.0, %v963_v47  ;;  %1466 = vst [vmem:[#allocation7 + $0x130] sm:$0xff] %v1202_v2  ;;  %v959_v18 = vsel %vm958_vm7, %v956_v58, %v953_v54  ;;  %v1221_v47 = vadd.f32 1.0, %v829_v36  ;;  %vm2216_vm9 = vcmp.lt.f32.partialorder %v966_v56, 0.0004427343 }
 0x225   :  { %1439 = vst [vmem:[#allocation7 + $0x58] sm:$0xff] %v959_v18  ;;  %v2222_v4 = vmax.f32 %v1975_v20, 0.0  ;;  %v973_v58 = vadd.f32 1.0, %v972_v8  ;;  %v1224_v10 = vmul.f32 -0.5, %v829_v36  ;;  %v978_v26 = vadd.f32 1.0, %v802_v9 }
 0x226   :  { %v1624_v6 = vpop.eup %1623  ;;  %v965_v55 = vmul.f32 %v964_v34, %v800_v11  ;;  %1631 = vlog2.f32 %v1221_v47  ;;  %v1217_v34 = vmul.f32 %v1216_v30, %v828_v42  ;;  %vm2227_vm10 = vcmp.lt.f32.partialorder %v1218_v60, 0.0004427343 }
 0x227   :  { %v1205_v14 = vmul.f32 0.6931472, %v1624_v6  ;;  %v1230_v12 = vadd.f32 1.0, %v2222_v4  ;;  %vm2231_vm11 = vcmp.lt.f32.partialorder %v975_v35, 0.0004427343  ;;  %1633 = vlog2.f32 %v978_v26 }
 0x228   :  { %v981_v61 = vmul.f32 -0.5, %v802_v9  ;;  %v1233_v54 = vmul.f32 -0.5, %v2222_v4  ;;  %v974_v2 = vmul.f32 %v973_v58, %v2187_v23  ;;  %v1227_v53 = vand.u32 2147483647, %v829_v36 }
 0x229   :  { %v1626_v7 = vpop.eup %1625  ;;  %v1211_v11 = vsel %vm2209_vm8, %v1208_v25, %v1205_v14  ;;  %1635 = vlog2.f32 %v1230_v12  ;;  %v1225_v18 = vadd.f32 1.0, %v1224_v10  ;;  %v803_v25 = vmax.f32 %v1977_v22, 0.0 }
 0x22a   :  { %v1628_v20 = vpop.eup %1627  ;;  %1467 = vst [vmem:[#allocation7 + $0x138] sm:$0xff] %v1211_v11  ;;  %v962_v19 = vmul.f32 0.6931472, %v1626_v7  ;;  %v831_v30 = vmax.f32 %v1981_v29, 0.0  ;;  %v984_v47 = vand.u32 2147483647, %v802_v9 }
 0x22b   :  { %v1214_v56 = vmul.f32 0.6931472, %v1628_v20  ;;  %v1630_v42 = vpop.eup %1629  ;;  %v982_v6 = vadd.f32 1.0, %v981_v61  ;;  %v1234_v23 = vadd.f32 1.0, %v1233_v54  ;;  %v987_v14 = vadd.f32 1.0, %v803_v25 }
 0x22c   :  { %v968_v8 = vsel %vm2216_vm9, %v965_v55, %v962_v19  ;;  %v971_v35 = vmul.f32 0.6931472, %v1630_v42  ;;  %v1239_v58 = vadd.f32 1.0, %v831_v30  ;;  %vm2245_vm12 = vcmp.lt.f32.partialorder %v1227_v53, 0.0004427343 }
 0x22d   :  { %1440 = vst [vmem:[#allocation7 + $0x60] sm:$0xff] %v968_v8  ;;  %v1220_v60 = vsel %vm2227_vm10, %v1217_v34, %v1214_v56  ;;  %v804_v22 = vmax.f32 %v1997_v44, 0.0  ;;  %v1226_v29 = vmul.f32 %v1225_v18, %v829_v36  ;;  %v1236_v10 = vand.u32 2147483647, %v2222_v4 }
 0x22e   :  { %1468 = vst [vmem:[#allocation7 + $0x140] sm:$0xff] %v1220_v60  ;;  %v977_v57 = vsel %vm2231_vm11, %v974_v2, %v971_v35  ;;  %1637 = vlog2.f32 %v987_v14  ;;  %v990_v12 = vmul.f32 -0.5, %v803_v25  ;;  %v1242_v7 = vmul.f32 -0.5, %v831_v30 }
 0x22f   :  { %1441 = vst [vmem:[#allocation7 + $0x68] sm:$0xff] %v977_v57  ;;  %1639 = vlog2.f32 %v1239_v58  ;;  %v996_v11 = vadd.f32 1.0, %v804_v22  ;;  %v983_v13 = vmul.f32 %v982_v6, %v802_v9  ;;  %vm2251_vm13 = vcmp.lt.f32.partialorder %v984_v47, 0.0004427343 }
 0x230   :  { %v1632_v26 = vpop.eup %1631  ;;  %v1235_v20 = vmul.f32 %v1234_v23, %v2222_v4  ;;  %v999_v44 = vmul.f32 -0.5, %v804_v22  ;;  %v2257_v36 = vmax.f32 %v1999_v45, 0.0  ;;  %v993_v54 = vand.u32 2147483647, %v803_v25 }
 0x231   :  { %v1223_v34 = vmul.f32 0.6931472, %v1632_v26  ;;  %1641 = vlog2.f32 %v996_v11  ;;  %v1634_v19 = vpop.eup %1633  ;;  %v1245_v56 = vand.u32 2147483647, %v831_v30  ;;  %v991_v53 = vadd.f32 1.0, %v990_v12 }
 0x232   :  { %v980_v9 = vmul.f32 0.6931472, %v1634_v19  ;;  %v1243_v42 = vadd.f32 1.0, %v1242_v7  ;;  %v1248_v8 = vadd.f32 1.0, %v2257_v36  ;;  %v1002_v4 = vand.u32 2147483647, %v804_v22 }
 0x233   :  { %v1229_v61 = vsel %vm2245_vm12, %v1226_v29, %v1223_v34  ;;  %v1636_v2 = vpop.eup %1635  ;;  %v805_v60 = vmax.f32 %v2008_v48, 0.0  ;;  %v2264_v45 = vmax.f32 %v2014_v1, 0.0  ;;  %vm1237_vm14 = vcmp.lt.f32.partialorder %v1236_v10, 0.0004427343 }
 0x234   :  { %1469 = vst [vmem:[#allocation7 + $0x148] sm:$0xff] %v1229_v61  ;;  %v1232_v18 = vmul.f32 0.6931472, %v1636_v2  ;;  %v986_v35 = vsel %vm2251_vm13, %v983_v13, %v980_v9  ;;  %v1000_v47 = vadd.f32 1.0, %v999_v44  ;;  %1643 = vlog2.f32 %v1248_v8 }
 0x235   :  { %1442 = vst [vmem:[#allocation7 + $0x70] sm:$0xff] %v986_v35  ;;  %vm2268_vm15 = vcmp.lt.f32.partialorder %v993_v54, 0.0004427343  ;;  %v1251_v14 = vmul.f32 -0.5, %v2257_v36  ;;  %v1005_v58 = vadd.f32 1.0, %v805_v60  ;;  %v992_v48 = vmul.f32 %v991_v53, %v803_v25 }
 0x236   :  { %v1238_v6 = vsel %vm1237_vm14, %v1235_v20, %v1232_v18  ;;  %v1244_v57 = vmul.f32 %v1243_v42, %v831_v30  ;;  %vm2273_vm0 = vcmp.lt.f32.partialorder %v1245_v56, 0.0004427343  ;;  %v1257_v55 = vadd.f32 1.0, %v2264_v45 }
 0x237   :  { %1470 = vst [vmem:[#allocation7 + $0x150] sm:$0xff] %v1238_v6  ;;  %vm2278_vm1 = vcmp.lt.f32.partialorder %v1002_v4, 0.0004427343  ;;  %v1254_v26 = vand.u32 2147483647, %v2257_v36  ;;  %1645 = vlog2.f32 %v1005_v58  ;;  %v1001_v11 = vmul.f32 %v1000_v47, %v804_v22 }
 0x238   :  { %v1638_v29 = vpop.eup %1637  ;;  %v1008_v34 = vmul.f32 -0.5, %v805_v60  ;;  %1647 = vlog2.f32 %v1257_v55  ;;  %v1252_v30 = vadd.f32 1.0, %v1251_v14  ;;  %v806_v13 = vmax.f32 %v2016_v40, 0.0 }
 0x239   :  { %v1640_v12 = vpop.eup %1639  ;;  %v989_v7 = vmul.f32 0.6931472, %v1638_v29  ;;  %v1260_v44 = vmul.f32 -0.5, %v2264_v45  ;;  %v1011_v54 = vand.u32 2147483647, %v805_v60  ;;  %v834_v9 = vmax.f32 %v2023_v50, 0.0 }
 0x23a   :  { %v1241_v25 = vmul.f32 0.6931472, %v1640_v12  ;;  %v1014_v56 = vadd.f32 1.0, %v806_v13  ;;  %v1009_v22 = vadd.f32 1.0, %v1008_v34  ;;  %v1263_v2 = vand.u32 2147483647, %v2264_v45 }
 0x23b   :  { %v1642_v15 = vpop.eup %1641  ;;  %v995_v20 = vsel %vm2268_vm15, %v992_v48, %v989_v7  ;;  %v807_v40 = vmax.f32 %v2027_v5, 0.0  ;;  %v1017_v42 = vmul.f32 -0.5, %v806_v13  ;;  %v2295_v8 = vmax.f32 %v2029_v62, 0.0 }
 0x23c   :  { %1443 = vst [vmem:[#allocation7 + $0x78] sm:$0xff] %v995_v20  ;;  %v1247_v19 = vsel %vm2273_vm0, %v1244_v57, %v1241_v25  ;;  %v998_v61 = vmul.f32 0.6931472, %v1642_v15  ;;  %1649 = vlog2.f32 %v1014_v56  ;;  %vm2297_vm2 = vcmp.lt.f32.partialorder %v1254_v26, 0.0004427343 }
 0x23d   :  { %1471 = vst [vmem:[#allocation7 + $0x158] sm:$0xff] %v1247_v19  ;;  %v1261_v35 = vadd.f32 1.0, %v1260_v44  ;;  %v1266_v47 = vadd.f32 1.0, %v834_v9  ;;  %v1253_v50 = vmul.f32 %v1252_v30, %v2257_v36  ;;  %vm2302_vm3 = vcmp.lt.f32.partialorder %v1011_v54, 0.0004427343 }
 0x23e   :  { %v1004_v53 = vsel %vm2278_vm1, %v1001_v11, %v998_v61  ;;  %v1644_v18 = vpop.eup %1643  ;;  %v1023_v23 = vadd.f32 1.0, %v807_v40  ;;  %v1010_v14 = vmul.f32 %v1009_v22, %v805_v60  ;;  %vm2306_vm4 = vcmp.lt.f32.partialorder %v1263_v2, 0.0004427343 }
 0x23f   :  { %1444 = vst [vmem:[#allocation7 + $0x80] sm:$0xff] %v1004_v53  ;;  %v1250_v6 = vmul.f32 0.6931472, %v1644_v18  ;;  %1651 = vlog2.f32 %v1266_v47  ;;  %v1018_v57 = vadd.f32 1.0, %v1017_v42  ;;  %v1275_v1 = vadd.f32 1.0, %v2295_v8 }
 0x240   :  { %1653 = vlog2.f32 %v1023_v23  ;;  %v1262_v29 = vmul.f32 %v1261_v35, %v2264_v45  ;;  %v1269_v10 = vmul.f32 -0.5, %v834_v9  ;;  %v1026_v60 = vmul.f32 -0.5, %v807_v40 }
 0x241   :  { %v1646_v58 = vpop.eup %1645  ;;  %v1256_v48 = vsel %vm2297_vm2, %v1253_v50, %v1250_v6  ;;  %v1020_v12 = vand.u32 2147483647, %v806_v13  ;;  %v1272_v7 = vand.u32 2147483647, %v834_v9  ;;  %1655 = vlog2.f32 %v1275_v1 }
 0x242   :  { %v1648_v36 = vpop.eup %1647  ;;  %1472 = vst [vmem:[#allocation7 + $0x160] sm:$0xff] %v1256_v48  ;;  %v1007_v55 = vmul.f32 0.6931472, %v1646_v58  ;;  %v1278_v34 = vmul.f32 -0.5, %v2295_v8  ;;  %v808_v25 = vmax.f32 %v2038_v28, 0.0  ;;  %v1019_v15 = vmul.f32 %v1018_v57, %v806_v13 }
 0x243   :  { %v1259_v26 = vmul.f32 0.6931472, %v1648_v36  ;;  %v1270_v45 = vadd.f32 1.0, %v1269_v10  ;;  %v1027_v20 = vadd.f32 1.0, %v1026_v60  ;;  %v1029_v44 = vand.u32 2147483647, %v807_v40 }
 0x244   :  { %v1013_v11 = vsel %vm2302_vm3, %v1010_v14, %v1007_v55  ;;  %v1032_v19 = vadd.f32 1.0, %v808_v25  ;;  %vm2320_vm5 = vcmp.lt.f32.partialorder %v1020_v12, 0.0004427343  ;;  %v1281_v56 = vand.u32 2147483647, %v2295_v8 }
 0x245   :  { %1445 = vst [vmem:[#allocation7 + $0x88] sm:$0xff] %v1013_v11  ;;  %v1265_v30 = vsel %vm2306_vm4, %v1262_v29, %v1259_v26  ;;  %v2326_v22 = vmax.f32 %v2040_v21, 0.0  ;;  %v809_v28 = vmax.f32 %v2052_v38, 0.0  ;;  %vm2329_vm6 = vcmp.lt.f32.partialorder %v1272_v7, 0.0004427343 }
 0x246   :  { %1473 = vst [vmem:[#allocation7 + $0x168] sm:$0xff] %v1265_v30  ;;  %v1650_v61 = vpop.eup %1649  ;;  %v1279_v53 = vadd.f32 1.0, %v1278_v34  ;;  %1657 = vlog2.f32 %v1032_v19  ;;  %v1035_v42 = vmul.f32 -0.5, %v808_v25  ;;  %v2335_v35 = vmax.f32 %v2054_v39, 0.0 }
 0x247   :  { %v1016_v2 = vmul.f32 0.6931472, %v1650_v61  ;;  %v1284_v18 = vadd.f32 1.0, %v2326_v22  ;;  %v1041_v4 = vadd.f32 1.0, %v809_v28  ;;  %v1271_v6 = vmul.f32 %v1270_v45, %v834_v9 }
 0x248   :  { %v1028_v38 = vmul.f32 %v1027_v20, %v807_v40  ;;  %vm2339_vm7 = vcmp.lt.f32.partialorder %v1029_v44, 0.0004427343  ;;  %vm2343_vm8 = vcmp.lt.f32.partialorder %v1281_v56, 0.0004427343  ;;  %v1280_v62 = vmul.f32 %v1279_v53, %v2295_v8 }
 0x249   :  { %v1652_v47 = vpop.eup %1651  ;;  %v1022_v21 = vsel %vm2320_vm5, %v1019_v15, %v1016_v2  ;;  %1659 = vlog2.f32 %v1284_v18  ;;  %v1038_v58 = vand.u32 2147483647, %v808_v25  ;;  %v1036_v40 = vadd.f32 1.0, %v1035_v42 }
 0x24a   :  { %v1654_v5 = vpop.eup %1653  ;;  %1446 = vst [vmem:[#allocation7 + $0x90] sm:$0xff] %v1022_v21  ;;  %v1268_v23 = vmul.f32 0.6931472, %v1652_v47  ;;  %1661 = vlog2.f32 %v1041_v4  ;;  %v1044_v57 = vmul.f32 -0.5, %v809_v28  ;;  %v1293_v1 = vadd.f32 1.0, %v2335_v35 }
 0x24b   :  { %v1025_v39 = vmul.f32 0.6931472, %v1654_v5  ;;  %v1656_v48 = vpop.eup %1655  ;;  %v1287_v29 = vmul.f32 -0.5, %v2326_v22  ;;  %v1290_v10 = vand.u32 2147483647, %v2326_v22  ;;  %v810_v60 = vmax.f32 %v2066_v46, 0.0 }
 0x24c   :  { %v1274_v9 = vsel %vm2329_vm6, %v1271_v6, %v1268_v23  ;;  %v1277_v55 = vmul.f32 0.6931472, %v1656_v48  ;;  %v1047_v8 = vand.u32 2147483647, %v809_v28  ;;  %1663 = vlog2.f32 %v1293_v1 }
 0x24d   :  { %1474 = vst [vmem:[#allocation7 + $0x170] sm:$0xff] %v1274_v9  ;;  %v1031_v36 = vsel %vm2339_vm7, %v1028_v38, %v1025_v39  ;;  %vm2358_vm9 = vcmp.lt.f32.partialorder %v1038_v58, 0.0004427343  ;;  %v1037_v7 = vmul.f32 %v1036_v40, %v808_v25  ;;  %v1045_v11 = vadd.f32 1.0, %v1044_v57 }
 0x24e   :  { %1447 = vst [vmem:[#allocation7 + $0x98] sm:$0xff] %v1031_v36  ;;  %v1283_v26 = vsel %vm2343_vm8, %v1280_v62, %v1277_v55  ;;  %v1296_v34 = vmul.f32 -0.5, %v2335_v35  ;;  %v1050_v30 = vadd.f32 1.0, %v810_v60  ;;  %v1288_v45 = vadd.f32 1.0, %v1287_v29 }
 0x24f   :  { %1475 = vst [vmem:[#allocation7 + $0x178] sm:$0xff] %v1283_v26  ;;  %v1053_v20 = vmul.f32 -0.5, %v810_v60  ;;  %v2364_v44 = vmax.f32 %v2068_v49, 0.0  ;;  %v811_v46 = vmax.f32 %v2076_v59, 0.0  ;;  %vm2367_vm10 = vcmp.lt.f32.partialorder %v1290_v10, 0.0004427343 }
 0x250   :  { %v1658_v15 = vpop.eup %1657  ;;  %vm2371_vm11 = vcmp.lt.f32.partialorder %v1047_v8, 0.0004427343  ;;  %1665 = vlog2.f32 %v1050_v30  ;;  %v1299_v25 = vand.u32 2147483647, %v2335_v35  ;;  %v2378_v49 = vmax.f32 %v2078_v0, 0.0 }
 0x251   :  { %v1034_v19 = vmul.f32 0.6931472, %v1658_v15  ;;  %v1302_v56 = vadd.f32 1.0, %v2364_v44  ;;  %v1059_v2 = vadd.f32 1.0, %v811_v46  ;;  %v1046_v53 = vmul.f32 %v1045_v11, %v809_v28 }
 0x252   :  { %v1297_v42 = vadd.f32 1.0, %v1296_v34  ;;  %v1289_v47 = vmul.f32 %v1288_v45, %v2326_v22  ;;  %v1054_v21 = vadd.f32 1.0, %v1053_v20  ;;  %v1305_v38 = vmul.f32 -0.5, %v2364_v44 }
 0x253   :  { %v1660_v13 = vpop.eup %1659  ;;  %v1040_v59 = vsel %vm2358_vm9, %v1037_v7, %v1034_v19  ;;  %1667 = vlog2.f32 %v1302_v56  ;;  %v1062_v50 = vmul.f32 -0.5, %v811_v46  ;;  %vm2386_vm12 = vcmp.lt.f32.partialorder %v1299_v25, 0.0004427343 }
 0x254   :  { %v1662_v18 = vpop.eup %1661  ;;  %1448 = vst [vmem:[#allocation7 + $0xa0] sm:$0xff] %v1040_v59  ;;  %v1286_v4 = vmul.f32 0.6931472, %v1660_v13  ;;  %1669 = vlog2.f32 %v1059_v2  ;;  %v1311_v28 = vadd.f32 1.0, %v2378_v49  ;;  %v1298_v14 = vmul.f32 %v1297_v42, %v2335_v35 }
 0x255   :  { %v1043_v6 = vmul.f32 0.6931472, %v1662_v18  ;;  %v1056_v39 = vand.u32 2147483647, %v810_v60  ;;  %v812_v62 = vmax.f32 %v2096_v16, 0.0  ;;  %v1055_v9 = vmul.f32 %v1054_v21, %v810_v60 }
 0x256   :  { %v1292_v0 = vsel %vm2367_vm10, %v1289_v47, %v1286_v4  ;;  %v1664_v23 = vpop.eup %1663  ;;  %v1065_v48 = vand.u32 2147483647, %v811_v46  ;;  %1671 = vlog2.f32 %v1311_v28  ;;  %v1306_v40 = vadd.f32 1.0, %v1305_v38 }
 0x257   :  { %1476 = vst [vmem:[#allocation7 + $0x180] sm:$0xff] %v1292_v0  ;;  %v1049_v22 = vsel %vm2371_vm11, %v1046_v53, %v1043_v6  ;;  %v1295_v58 = vmul.f32 0.6931472, %v1664_v23  ;;  %v1063_v57 = vadd.f32 1.0, %v1062_v50  ;;  %v1068_v1 = vadd.f32 1.0, %v812_v62 }
 0x258   :  { %1449 = vst [vmem:[#allocation7 + $0xa8] sm:$0xff] %v1049_v22  ;;  %v1314_v55 = vmul.f32 -0.5, %v2378_v49  ;;  %v2399_v29 = vmax.f32 %v2098_v17, 0.0  ;;  %vm2401_vm13 = vcmp.lt.f32.partialorder %v1056_v39, 0.0004427343  ;;  %v1071_v26 = vmul.f32 -0.5, %v812_v62 }
 0x259   :  { %v1301_v36 = vsel %vm2386_vm12, %v1298_v14, %v1295_v58  ;;  %v1308_v10 = vand.u32 2147483647, %v2364_v44  ;;  %1673 = vlog2.f32 %v1068_v1  ;;  %vm2406_vm14 = vcmp.lt.f32.partialorder %v1065_v48, 0.0004427343 }
 0x25a   :  { %v1666_v35 = vpop.eup %1665  ;;  %1477 = vst [vmem:[#allocation7 + $0x188] sm:$0xff] %v1301_v36  ;;  %v1320_v12 = vadd.f32 1.0, %v2399_v29  ;;  %v1307_v17 = vmul.f32 %v1306_v40, %v2364_v44  ;;  %v1317_v7 = vand.u32 2147483647, %v2378_v49  ;;  %v813_v11 = vmax.f32 %v2102_v27, 0.0 }
 0x25b   :  { %v1052_v8 = vmul.f32 0.6931472, %v1666_v35  ;;  %v2415_v34 = vmax.f32 %v2108_v52, 0.0  ;;  %v1064_v45 = vmul.f32 %v1063_v57, %v811_v46  ;;  %v1315_v20 = vadd.f32 1.0, %v1314_v55 }
 0x25c   :  { %1675 = vlog2.f32 %v1320_v12  ;;  %v1074_v54 = vand.u32 2147483647, %v812_v62  ;;  %v1077_v25 = vadd.f32 1.0, %v813_v11  ;;  %vm1309_vm15 = vcmp.lt.f32.partialorder %v1308_v10, 0.0004427343 }
 0x25d   :  { %v1668_v30 = vpop.eup %1667  ;;  %v1058_v15 = vsel %vm2401_vm13, %v1055_v9, %v1052_v8  ;;  %v1072_v56 = vadd.f32 1.0, %v1071_v26  ;;  %v1329_v27 = vadd.f32 1.0, %v2415_v34  ;;  %vm2420_vm0 = vcmp.lt.f32.partialorder %v1317_v7, 0.0004427343 }
 0x25e   :  { %v1670_v19 = vpop.eup %1669  ;;  %1450 = vst [vmem:[#allocation7 + $0xb0] sm:$0xff] %v1058_v15  ;;  %v1304_v61 = vmul.f32 0.6931472, %v1668_v30  ;;  %v1323_v13 = vmul.f32 -0.5, %v2399_v29  ;;  %1677 = vlog2.f32 %v1077_v25  ;;  %v1316_v53 = vmul.f32 %v1315_v20, %v2378_v49 }
 0x25f   :  { %v1061_v44 = vmul.f32 0.6931472, %v1670_v19  ;;  %v1080_v42 = vmul.f32 -0.5, %v813_v11  ;;  %1679 = vlog2.f32 %v1329_v27  ;;  %vm2428_vm1 = vcmp.lt.f32.partialorder %v1074_v54, 0.0004427343 }
 0x260   :  { %v1310_v2 = vsel %vm1309_vm15, %v1307_v17, %v1304_v61  ;;  %v1672_v46 = vpop.eup %1671  ;;  %v814_v47 = vmax.f32 %v2113_v32, 0.0  ;;  %v1073_v21 = vmul.f32 %v1072_v56, %v812_v62  ;;  %v1326_v6 = vand.u32 2147483647, %v2399_v29 }
 0x261   :  { %1478 = vst [vmem:[#allocation7 + $0x190] sm:$0xff] %v1310_v2  ;;  %v1067_v59 = vsel %vm2406_vm14, %v1064_v45, %v1061_v44  ;;  %v1313_v18 = vmul.f32 0.6931472, %v1672_v46  ;;  %v1324_v0 = vadd.f32 1.0, %v1323_v13  ;;  %v1332_v49 = vmul.f32 -0.5, %v2415_v34 }
 0x262   :  { %1451 = vst [vmem:[#allocation7 + $0xb8] sm:$0xff] %v1067_v59  ;;  %v1086_v5 = vadd.f32 1.0, %v814_v47  ;;  %v1081_v23 = vadd.f32 1.0, %v1080_v42  ;;  %v2438_v22 = vmax.f32 %v2115_v24, 0.0  ;;  %v2441_v14 = vmax.f32 %v2123_v33, 0.0  ;;  %v2645_v42 = vld [vmem:[#allocation11_spill] sm:$0xff] }
 0x263   :  { %v1674_v38 = vpop.eup %1673  ;;  %v1319_v50 = vsel %vm2420_vm0, %v1316_v53, %v1313_v18  ;;  %v1083_v32 = vand.u32 2147483647, %v813_v11  ;;  %v2444_v39 = vmax.f32 %v2125_v43, 0.0  ;;  %vm2448_vm2 = vcmp.lt.f32.partialorder %v1326_v6, 0.0004427343 }
 0x264   :  { %1479 = vst [vmem:[#allocation7 + $0x198] sm:$0xff] %v1319_v50  ;;  %v1070_v28 = vmul.f32 0.6931472, %v1674_v38  ;;  %1681 = vlog2.f32 %v1086_v5  ;;  %v1089_v9 = vmul.f32 -0.5, %v814_v47  ;;  %v1338_v24 = vadd.f32 1.0, %v2438_v22 }
 0x265   :  { %v1325_v33 = vmul.f32 %v1324_v0, %v2399_v29  ;;  %v1333_v57 = vadd.f32 1.0, %v1332_v49  ;;  %v1095_v1 = vadd.f32 1.0, %v2441_v14  ;;  %v1082_v43 = vmul.f32 %v1081_v23, %v813_v11 }
 0x266   :  { %v1676_v62 = vpop.eup %1675  ;;  %v1076_v58 = vsel %vm2428_vm1, %v1073_v21, %v1070_v28  ;;  %v1335_v36 = vand.u32 2147483647, %v2415_v34  ;;  %1683 = vlog2.f32 %v1338_v24  ;;  %vm2458_vm3 = vcmp.lt.f32.partialorder %v1083_v32, 0.0004427343 }
 0x267   :  { %1452 = vst [vmem:[#allocation7 + $0xc0] sm:$0xff] %v1076_v58  ;;  %v1322_v40 = vmul.f32 0.6931472, %v1676_v62  ;;  %1685 = vlog2.f32 %v1095_v1  ;;  %v1347_v10 = vadd.f32 1.0, %v2444_v39  ;;  %v1090_v60 = vadd.f32 1.0, %v1089_v9 }
 0x268   :  { %v1678_v55 = vpop.eup %1677  ;;  %v1341_v26 = vmul.f32 -0.5, %v2438_v22  ;;  %v1098_v12 = vmul.f32 -0.5, %v2441_v14  ;;  %v1334_v7 = vmul.f32 %v1333_v57, %v2415_v34  ;;  %v1092_v11 = vand.u32 2147483647, %v814_v47 }
 0x269   :  { %v1328_v35 = vsel %vm2448_vm2, %v1325_v33, %v1322_v40  ;;  %v1680_v8 = vpop.eup %1679  ;;  %v1079_v29 = vmul.f32 0.6931472, %v1678_v55  ;;  %1687 = vlog2.f32 %v1347_v10  ;;  %vm1336_vm4 = vcmp.lt.f32.partialorder %v1335_v36, 0.0004427343 }
 0x26a   :  { %1480 = vst [vmem:[#allocation7 + $0x1a0] sm:$0xff] %v1328_v35  ;;  %v1331_v17 = vmul.f32 0.6931472, %v1680_v8  ;;  %v844_v15 = vmax.f32 %v2145_v31, 0.0  ;;  %v1350_v20 = vmul.f32 -0.5, %v2444_v39  ;;  %v1091_v19 = vmul.f32 %v1090_v60, %v814_v47 }
 0x26b   :  { %v1085_v30 = vsel %vm2458_vm3, %v1082_v43, %v1079_v29  ;;  %v1342_v61 = vadd.f32 1.0, %v1341_v26  ;;  %v1099_v54 = vadd.f32 1.0, %v1098_v12  ;;  %vm2470_vm5 = vcmp.lt.f32.partialorder %v1092_v11, 0.0004427343  ;;  %v2652_v26 = vld [vmem:[#allocation12_spill] sm:$0xff] }
 0x26c   :  { %1453 = vst [vmem:[#allocation7 + $0xc8] sm:$0xff] %v1085_v30  ;;  %v1337_v45 = vsel %vm1336_vm4, %v1334_v7, %v1331_v17  ;;  %v1356_v25 = vadd.f32 1.0, %v844_v15  ;;  %v1101_v56 = vand.u32 2147483647, %v2441_v14  ;;  %v2476_v27 = vmax.f32 %v2152_v63, 0.0 }
 0x26d   :  { %1481 = vst [vmem:[#allocation7 + $0x1a8] sm:$0xff] %v1337_v45  ;;  %v2479_v31 = vmax.f32 %v2155_v41, 0.0  ;;  %v1344_v52 = vand.u32 2147483647, %v2438_v22  ;;  %v1353_v13 = vand.u32 2147483647, %v2444_v39  ;;  %v1343_v41 = vmul.f32 %v1342_v61, %v2438_v22 }
 0x26e   :  { %v1682_v44 = vpop.eup %1681  ;;  %1689 = vlog2.f32 %v1356_v25  ;;  %v1351_v46 = vadd.f32 1.0, %v1350_v20  ;;  %v1365_v59 = vadd.f32 1.0, %v2476_v27  ;;  %v2486_v18 = vmax.f32 %v2645_v42, 0.0 }
 0x26f   :  { %v1088_v2 = vmul.f32 0.6931472, %v1682_v44  ;;  %v1374_v53 = vadd.f32 1.0, %v2479_v31  ;;  %v1100_v47 = vmul.f32 %v1099_v54, %v2441_v14  ;;  %v1359_v21 = vmul.f32 -0.5, %v844_v15 }
 0x270   :  { %v1684_v4 = vpop.eup %1683  ;;  %vm2492_vm6 = vcmp.lt.f32.partialorder %v1101_v56, 0.0004427343  ;;  %1691 = vlog2.f32 %v1365_v59  ;;  %vm1345_vm7 = vcmp.lt.f32.partialorder %v1344_v52, 0.0004427343  ;;  %vm2496_vm8 = vcmp.lt.f32.partialorder %v1353_v13, 0.0004427343 }
 0x271   :  { %v1094_v63 = vsel %vm2470_vm5, %v1091_v19, %v1088_v2  ;;  %v1686_v6 = vpop.eup %1685  ;;  %v1340_v38 = vmul.f32 0.6931472, %v1684_v4  ;;  %1693 = vlog2.f32 %v1374_v53  ;;  %v1352_v23 = vmul.f32 %v1351_v46, %v2444_v39 }
 0x272   :  { %1454 = vst [vmem:[#allocation7 + $0xd0] sm:$0xff] %v1094_v63  ;;  %v1097_v0 = vmul.f32 0.6931472, %v1686_v6  ;;  %v1362_v22 = vand.u32 2147483647, %v844_v15  ;;  %v1383_v14 = vadd.f32 1.0, %v2486_v18 }
 0x273   :  { %v1688_v5 = vpop.eup %1687  ;;  %v1346_v28 = vsel %vm1345_vm7, %v1343_v41, %v1340_v38  ;;  %v1360_v58 = vadd.f32 1.0, %v1359_v21  ;;  %v1368_v48 = vmul.f32 -0.5, %v2476_v27  ;;  %v1377_v9 = vmul.f32 -0.5, %v2479_v31 }
 0x274   :  { %1482 = vst [vmem:[#allocation7 + $0x1b0] sm:$0xff] %v1346_v28  ;;  %v1103_v32 = vsel %vm2492_vm6, %v1100_v47, %v1097_v0  ;;  %v1349_v62 = vmul.f32 0.6931472, %v1688_v5  ;;  %1695 = vlog2.f32 %v1383_v14  ;;  %v848_v24 = vmax.f32 %v2180_v37, 0.0 }
 0x275   :  { %1455 = vst [vmem:[#allocation7 + $0xd8] sm:$0xff] %v1103_v32  ;;  %v1371_v40 = vand.u32 2147483647, %v2476_v27  ;;  %v1386_v33 = vmul.f32 -0.5, %v2486_v18  ;;  %vm2511_vm9 = vcmp.lt.f32.partialorder %v1362_v22, 0.0004427343  ;;  %v1361_v16 = vmul.f32 %v1360_v58, %v844_v15 }
 0x276   :  { %v1355_v39 = vsel %vm2496_vm8, %v1352_v23, %v1349_v62  ;;  %v1392_v57 = vadd.f32 1.0, %v848_v24  ;;  %v1369_v36 = vadd.f32 1.0, %v1368_v48  ;;  %v849_v55 = vmax.f32 %v2189_v51, 0.0 }
 0x277   :  { %1483 = vst [vmem:[#allocation7 + $0x1b8] sm:$0xff] %v1355_v39  ;;  %v850_v35 = vmax.f32 %v2194_v3, 0.0  ;;  %v1378_v10 = vadd.f32 1.0, %v1377_v9  ;;  %v1380_v8 = vand.u32 2147483647, %v2479_v31  ;;  %v851_v12 = vmax.f32 %v2652_v26, 0.0 }
 0x278   :  { %v1690_v1 = vpop.eup %1689  ;;  %1697 = vlog2.f32 %v1392_v57  ;;  %v1401_v29 = vadd.f32 1.0, %v849_v55  ;;  %vm2521_vm10 = vcmp.lt.f32.partialorder %v1371_v40, 0.0004427343  ;;  %v1387_v51 = vadd.f32 1.0, %v1386_v33 }
 0x279   :  { %v1358_v37 = vmul.f32 0.6931472, %v1690_v1  ;;  %v1410_v60 = vadd.f32 1.0, %v850_v35  ;;  %v1370_v15 = vmul.f32 %v1369_v36, %v2476_v27  ;;  %v1395_v45 = vmul.f32 -0.5, %v848_v24 }
 0x27a   :  { %v1692_v17 = vpop.eup %1691  ;;  %1699 = vlog2.f32 %v1401_v29  ;;  %v1379_v19 = vmul.f32 %v1378_v10, %v2479_v31  ;;  %v1389_v61 = vand.u32 2147483647, %v2486_v18  ;;  %vm1381_vm11 = vcmp.lt.f32.partialorder %v1380_v8, 0.0004427343 }
 0x27b   :  { %v1364_v7 = vsel %vm2511_vm9, %v1361_v16, %v1358_v37  ;;  %v1694_v3 = vpop.eup %1693  ;;  %v1367_v30 = vmul.f32 0.6931472, %v1692_v17  ;;  %1701 = vlog2.f32 %v1410_v60  ;;  %v1419_v25 = vadd.f32 1.0, %v851_v12 }
 0x27c   :  { %1484 = vst [vmem:[#allocation7 + $0x1c0] sm:$0xff] %v1364_v7  ;;  %v1376_v20 = vmul.f32 0.6931472, %v1694_v3  ;;  %v1388_v56 = vmul.f32 %v1387_v51, %v2486_v18  ;;  %v1404_v2 = vmul.f32 -0.5, %v849_v55  ;;  %v1396_v52 = vadd.f32 1.0, %v1395_v45 }
 0x27d   :  { %v1373_v54 = vsel %vm2521_vm10, %v1370_v15, %v1367_v30  ;;  %v1413_v13 = vmul.f32 -0.5, %v850_v35  ;;  %1703 = vlog2.f32 %v1419_v25  ;;  %vm1390_vm12 = vcmp.lt.f32.partialorder %v1389_v61, 0.0004427343 }
 0x27e   :  { %v1696_v44 = vpop.eup %1695  ;;  %1485 = vst [vmem:[#allocation7 + $0x1c8] sm:$0xff] %v1373_v54  ;;  %v1382_v34 = vsel %vm1381_vm11, %v1379_v19, %v1376_v20  ;;  %v1398_v31 = vand.u32 2147483647, %v848_v24  ;;  %v1405_v53 = vadd.f32 1.0, %v1404_v2  ;;  %v1422_v42 = vmul.f32 -0.5, %v851_v12 }
 0x27f   :  { %1486 = vst [vmem:[#allocation7 + $0x1d0] sm:$0xff] %v1382_v34  ;;  %v1385_v27 = vmul.f32 0.6931472, %v1696_v44  ;;  %v1397_v63 = vmul.f32 %v1396_v52, %v848_v24  ;;  %v1407_v41 = vand.u32 2147483647, %v849_v55  ;;  %v1414_v47 = vadd.f32 1.0, %v1413_v13 }
 0x280   :  { %vm1399_vm13 = vcmp.lt.f32.partialorder %v1398_v31, 0.0004427343  ;;  %v1416_v21 = vand.u32 2147483647, %v850_v35  ;;  %v1406_v0 = vmul.f32 %v1405_v53, %v849_v55  ;;  %v1423_v49 = vadd.f32 1.0, %v1422_v42 }
 0x281   :  { %v1391_v46 = vsel %vm1390_vm12, %v1388_v56, %v1385_v27  ;;  %vm1408_vm14 = vcmp.lt.f32.partialorder %v1407_v41, 0.0004427343  ;;  %v1415_v28 = vmul.f32 %v1414_v47, %v850_v35  ;;  %v1425_v23 = vand.u32 2147483647, %v851_v12 }
 0x282   :  { %v1698_v59 = vpop.eup %1697  ;;  %1487 = vst [vmem:[#allocation7 + $0x1d8] sm:$0xff] %v1391_v46  ;;  %vm1417_vm15 = vcmp.lt.f32.partialorder %v1416_v21, 0.0004427343  ;;  %v1424_v58 = vmul.f32 %v1423_v49, %v851_v12 }
 0x283   :  { %v1394_v4 = vmul.f32 0.6931472, %v1698_v59  ;;  %vm1426_vm0 = vcmp.lt.f32.partialorder %v1425_v23, 0.0004427343 }
 0x284   :  { %v1700_v18 = vpop.eup %1699 }
 0x285   :  { %v1400_v6 = vsel %vm1399_vm13, %v1397_v63, %v1394_v4  ;;  %v1702_v38 = vpop.eup %1701  ;;  %v1403_v50 = vmul.f32 0.6931472, %v1700_v18 }
 0x286   :  { %1488 = vst [vmem:[#allocation7 + $0x1e0] sm:$0xff] %v1400_v6  ;;  %v1412_v5 = vmul.f32 0.6931472, %v1702_v38 }
 0x287   :  { %v1409_v22 = vsel %vm1408_vm14, %v1406_v0, %v1403_v50  ;;  %v1704_v14 = vpop.eup %1703 }
 0x288   :  { %1489 = vst [vmem:[#allocation7 + $0x1e8] sm:$0xff] %v1409_v22  ;;  %v1418_v32 = vsel %vm1417_vm15, %v1415_v28, %v1412_v5  ;;  %v1421_v62 = vmul.f32 0.6931472, %v1704_v14 }
 0x289   :  { %1490 = vst [vmem:[#allocation7 + $0x1f0] sm:$0xff] %v1418_v32 }
 0x28a   :  { %v1427_v48 = vsel %vm1426_vm0, %v1424_v58, %v1421_v62 }
 0x28b   :  { %1491 = vst [vmem:[#allocation7 + $0x1f8] sm:$0xff] %v1427_v48 }
 0x28c   :  { %1760 = shalt.err (!%p1757_p8)
}
 0x28d   :  { %s1761_s22 = scalar_lea.hbm %s2546_s3, 8192 }
 0x28e   :  { %p1762_p9 = scmp.ne.s32.totalorder %s2546_s3, %s1761_s22  ;;  %p1765_p10 = scmp.lt.u32.totalorder %s1761_s22, %s2546_s3 }
 0x290   :  { %p1767_p11 = pnand %p1765_p10, %p1762_p9 }
 0x292   :  { %1770 = shalt.err (!%p1767_p11)
}
 0x293   :  { %s1785_s27 = smov 256   ;;  %s1786_s28 = smov 16  }
 0x294   :  { %1503 = dma.vmem_to_hbm [thread:$0]  %s1498_s2, 8192, %s2546_s3, [#allocation4], %s1785_s27, %s1785_s27, %s1786_s28  }
 0x295   :  { %1775 = dma.done.wait [#allocation4], 8192  }
 0x296   :  { %1776 = vsyncadd [#allocation4], 4294959104 }
 0x297   :  { %1507 = vsyncpa [#allocation3], 1 }
 0x298   :  { %1508 = vsyncpa [#allocation6], 1 }
 0x299   :  { %1509 = vsyncpa [#allocation4], 1 }

// kernel: _simple_resize_impl.1
= control target key start
LH: loop header
LB: loop body
LE: loop exit
PB: predicated region body
PF: predicated region fallthrough
CT: control target
= control target key end

     0   :  { %8 = vsyncpa [#allocation3], 0  ;;  %s2543_s0 = inlined_call_operand.hbm [shape: bf16[256,16], index: 0, kind: input, shape index: {}]   ;;  %s2544_s1 = inlined_call_operand.hbm [shape: f32[4,16,16], index: 1, kind: input, shape index: {}]   ;;  %s2545_s2 = inlined_call_operand.vmem [shape: bf16[16,256], index: 2, kind: input, shape index: {}]   ;;  %s2546_s3 = inlined_call_operand.hbm [shape: f32[256,256], index: 3, kind: output, shape index: {}]  }
   0x1   :  { %9 = vsyncpa [#allocation6], 0 }
   0x2   :  { %10 = vsyncpa [#allocation4], 0  ;;  %s1777_s12 = smov [#allocation2]   ;;  %s1705_s16 = scalar_lea.hbm %s2543_s0, 2048 }
   0x3   :  { %s16_s13 = sshll.u32 %s1777_s12, 4  ;;  %p1706_p0 = scmp.ne.s32.totalorder %s2543_s0, %s1705_s16  ;;  %s17_s13 = int_to_ptr.vmem [resolvable:$true] %s16_s13 }
   0x4   :  { %p1709_p1 = scmp.lt.u32.totalorder %s1705_s16, %s2543_s0 }
   0x6   :  { %p1711_p2 = pnand %p1709_p1, %p1706_p0 }
   0x8   :  { %1714 = shalt.err (!%p1711_p2)
}
   0x9   :  { %s1715_s21 = scalar_lea.vmem %s17_s13, 2048  ;;  %p1720_p4 = scmp.lt.s32.totalorder %s17_s13, %s17_s13 }
   0xa   :  { %p1716_p3 = scmp.ne.s32.totalorder %s17_s13, %s1715_s21  ;;  %p1721_p5 = scmp.lt.s32.totalorder %s1715_s21, %s1715_s21 }
   0xc   :  { %p1722_p6 = por %p1721_p5, %p1720_p4 }
   0xe   :  { %p1723_p7 = pnand %p1722_p6, %p1716_p3 }
  0x10   :  { %1726 = shalt.err (!%p1723_p7)
}
  0x11   :  { %s1778_s22 = smov 64   ;;  %s1779_s23 = smov 4  }
  0x12   :  { %22 = dma.hbm_to_vmem [thread:$0]  %s2543_s0, 2048, %s17_s13, [#allocation3], %s1778_s22, %s1778_s22, %s1779_s23  }
  0x13   :  { %s1780_s26 = smov [#allocation5]   ;;  %s1727_s30 = scalar_lea.hbm %s2544_s1, 256 }
  0x14   :  { %s28_s27 = sshll.u32 %s1780_s26, 4  ;;  %p1728_p8 = scmp.ne.s32.totalorder %s2544_s1, %s1727_s30  ;;  %s29_s27 = int_to_ptr.vmem [resolvable:$true] %s28_s27 }
  0x15   :  { %s1729_s8 = scalar_lea.hbm %s2544_s1, 1024  ;;  %p1731_p10 = scmp.lt.u32.totalorder %s1727_s30, %s2544_s1 }
  0x16   :  { %p1730_p9 = scmp.lt.u32.totalorder %s1729_s8, %s1727_s30 }
  0x18   :  { %p1732_p11 = por %p1731_p10, %p1730_p9 }
  0x1a   :  { %p1733_p12 = pnand %p1732_p11, %p1728_p8 }
  0x1c   :  { %1736 = shalt.err (!%p1733_p12)
}
  0x1d   :  { %s1737_s0 = scalar_lea.vmem %s29_s27, 256  ;;  %p1742_p0 = scmp.lt.s32.totalorder %s29_s27, %s29_s27 }
  0x1e   :  { %p1738_p13 = scmp.ne.s32.totalorder %s29_s27, %s1737_s0  ;;  %p1743_p1 = scmp.lt.s32.totalorder %s1737_s0, %s1737_s0 }
  0x20   :  { %p1744_p2 = por %p1743_p1, %p1742_p0 }
  0x22   :  { %p1745_p3 = pnand %p1744_p2, %p1738_p13 }
  0x24   :  { %1748 = shalt.err (!%p1745_p3)
}
  0x25   :  { %s1781_s11 = smov 128   ;;  %s1782_s12 = smov 8  }
  0x26   :  { %34 = dma.hbm_to_vmem [thread:$0]  %s2544_s1, 256, %s29_s27, [#allocation6], %s1781_s11, %s1781_s11, %s1782_s12  }
  0x27   :  { %1771 = dma.done.wait [#allocation3], 2048  }
  0x28   :  { %1772 = vsyncadd [#allocation3], 4294965248 }
  0x29   :  { %1773 = dma.done.wait [#allocation6], 256  }
  0x2a   :  { %1774 = vsyncadd [#allocation6], 4294967040  ;;  %v1783_v0 = vmov 0   ;;  %v1558_v1 = vld [vmem:[%s2545_s2 + $0x4] ss:$8 sps:$4 sm:$0xff]   ;;  %vm127_vm0 = vcmask 130048  }
  0x2b   :  { %163 = vmatprep.mubr.bf16.mxu0 %v1783_v0  ;;  %502 = vmatprep.mubr.bf16.mxu1 %v1783_v0  ;;  %v1560_v2 = vld [vmem:[%s2545_s2] ss:$8 sps:$4 sm:$0xff]   ;;  %v1562_v13 = vld [vmem:[#allocation2 + $0x38] sm:$0xff]   ;;  %v1565_v16 = vld [vmem:[#allocation2 + $0x10] sm:$0xff]   ;;  %s1784_s1 = smov [#allocation7]  }
  0x2c   :  { %v112_v3 = vld [vmem:[#allocation5] sm:$0xff]  ;;  %v113_v4 = vld [vmem:[#allocation5 + $0x8] sm:$0xff]  ;;  %131 = vmatprep.subr.bf16.mxu0 %v1558_v1  ;;  %v1567_v18 = vld [vmem:[#allocation2 + $0x18] sm:$0xff]   ;;  %s1497_s2 = sshll.u32 %s1784_s1, 4  ;;  %s1498_s2 = int_to_ptr.vmem [resolvable:$true] %s1497_s2 }
  0x2d   :  { %v114_v5 = vpack.c.bf16 %v113_v4, %v112_v3  ;;  %132 = vmatpush1.bf16.msra.mxu0 %v1560_v2  ;;  %v1561_v12 = vld [vmem:[#allocation2] sm:$0xff]   ;;  %v1563_v14 = vld [vmem:[#allocation2 + $0x8] sm:$0xff]   ;;  %v1568_v19 = vld [vmem:[#allocation2 + $0x50] sm:$0xff]   ;;  %s1749_s19 = scalar_lea.vmem %s1498_s2, 8192  ;;  %p1754_p5 = scmp.lt.s32.totalorder %s1498_s2, %s1498_s2 }
  0x2e   :  { %v1564_v15 = vld [vmem:[#allocation2 + $0x40] sm:$0xff]   ;;  %v1566_v17 = vld [vmem:[#allocation2 + $0x48] sm:$0xff]   ;;  %v1570_v21 = vld [vmem:[#allocation2 + $0x58] sm:$0xff]   ;;  %p1750_p4 = scmp.ne.s32.totalorder %s1498_s2, %s1749_s19  ;;  %p1755_p6 = scmp.lt.s32.totalorder %s1749_s19, %s1749_s19 }
  0x2f   :  { %v1569_v20 = vld [vmem:[#allocation2 + $0x20] sm:$0xff]   ;;  %v1571_v22 = vld [vmem:[#allocation2 + $0x28] sm:$0xff]   ;;  %v1573_v24 = vld [vmem:[#allocation2 + $0x30] sm:$0xff]  }
  0x30   :  { %1512 = vmatmul.mubr.msk.bf16.vlgmr.msra.gmra.mrb[0].mxu0 %vm127_vm0, %v114_v5  ;;  %v1572_v23 = vld [vmem:[#allocation2 + $0x60] sm:$0xff]   ;;  %v1574_v25 = vld [vmem:[#allocation2 + $0x68] sm:$0xff]   ;;  %v1575_v26 = vld [vmem:[#allocation2 + $0x70] sm:$0xff]   ;;  %p1756_p7 = por %p1755_p6, %p1754_p5 }
  0x31   :  { %432 = vmatprep.mubr.bf16.mxu0 %v1783_v0  ;;  %v1576_v27 = vld [vmem:[#allocation2 + $0x78] sm:$0xff]  }
  0x32   :  { %p1757_p8 = pnand %p1756_p7, %p1750_p4 }
 0x103   :  { %v165_v6 = vpop.f32.mrb[0].mxu0 }
 0x104   :  { %v167_v7 = vpop.f32.mrb[1].mxu0 }
 0x105   :  { %v169_v8 = vpop.f32.mrb[2].mxu0 }
 0x106   :  { %v270_v9 = vpack.c.bf16 %v169_v8, %v165_v6  ;;  %v171_v10 = vpop.f32.mrb[3].mxu0 }
 0x107   :  { %v271_v11 = vpack.c.bf16 %v171_v10, %v167_v7 }
 0x109   :  { %400 = vmatprep.subr.bf16.mxu0 %v271_v11  ;;  %1545 = vmatprep.subr.bf16.mxu1 %v271_v11 }
 0x10a   :  { %401 = vmatpush1.bf16.msra.mxu0 %v270_v9  ;;  %1546 = vmatpush1.bf16.msra.mxu1 %v270_v9 }
 0x10d   :  { %1529 = vmatmul.mubr.msk.bf16.vlgmr.msra.gmra.mrb[4].mxu0 %vm127_vm0, %v1561_v12  ;;  %1536 = vmatmul.mubr.msk.bf16.vlgmr.msra.gmra.mrb[0].mxu1 %vm127_vm0, %v1562_v13 }
 0x10e   :  { %442 = vmatprep.mubr.bf16.mxu0 %v1783_v0  ;;  %512 = vmatprep.mubr.bf16.mxu1 %v1783_v0 }
 0x115   :  { %1530 = vmatmul.mubr.msk.bf16.gmra.mrb[8].mxu0 %vm127_vm0, %v1563_v14  ;;  %1537 = vmatmul.mubr.msk.bf16.gmra.mrb[4].mxu1 %vm127_vm0, %v1564_v15 }
 0x116   :  { %452 = vmatprep.mubr.bf16.mxu0 %v1783_v0  ;;  %522 = vmatprep.mubr.bf16.mxu1 %v1783_v0 }
 0x11d   :  { %1531 = vmatmul.mubr.msk.bf16.gmra.mrb[12].mxu0 %vm127_vm0, %v1565_v16  ;;  %1538 = vmatmul.mubr.msk.bf16.gmra.mrb[8].mxu1 %vm127_vm0, %v1566_v17 }
 0x11e   :  { %462 = vmatprep.mubr.bf16.mxu0 %v1783_v0  ;;  %532 = vmatprep.mubr.bf16.mxu1 %v1783_v0 }
 0x125   :  { %1532 = vmatmul.mubr.msk.bf16.gmra.mrb[16].mxu0 %vm127_vm0, %v1567_v18  ;;  %1539 = vmatmul.mubr.msk.bf16.gmra.mrb[12].mxu1 %vm127_vm0, %v1568_v19 }
 0x126   :  { %472 = vmatprep.mubr.bf16.mxu0 %v1783_v0  ;;  %542 = vmatprep.mubr.bf16.mxu1 %v1783_v0 }
 0x12d   :  { %1533 = vmatmul.mubr.msk.bf16.gmra.mrb[20].mxu0 %vm127_vm0, %v1569_v20  ;;  %1540 = vmatmul.mubr.msk.bf16.gmra.mrb[16].mxu1 %vm127_vm0, %v1570_v21 }
 0x12e   :  { %482 = vmatprep.mubr.bf16.mxu0 %v1783_v0  ;;  %552 = vmatprep.mubr.bf16.mxu1 %v1783_v0 }
 0x135   :  { %1534 = vmatmul.mubr.msk.bf16.gmra.mrb[24].mxu0 %vm127_vm0, %v1571_v22  ;;  %1541 = vmatmul.mubr.msk.bf16.gmra.mrb[20].mxu1 %vm127_vm0, %v1572_v23 }
 0x136   :  { %492 = vmatprep.mubr.bf16.mxu0 %v1783_v0  ;;  %562 = vmatprep.mubr.bf16.mxu1 %v1783_v0 }
 0x13d   :  { %1535 = vmatmul.mubr.msk.bf16.gmra.mrb[28].mxu0 %vm127_vm0, %v1573_v24  ;;  %1542 = vmatmul.mubr.msk.bf16.gmra.mrb[24].mxu1 %vm127_vm0, %v1574_v25 }
 0x13e   :  { %572 = vmatprep.mubr.bf16.mxu1 %v1783_v0 }
 0x145   :  { %1543 = vmatmul.mubr.msk.bf16.gmra.mrb[28].mxu1 %vm127_vm0, %v1575_v26 }
 0x146   :  { %582 = vmatprep.mubr.bf16.mxu1 %v1783_v0 }
 0x14d   :  { %1544 = vmatmul.mubr.msk.bf16.gmra.mrb[32].mxu1 %vm127_vm0, %v1576_v27 }
 0x1e0   :  { %v434_v28 = vpop.f32.mrb[4].mxu0  ;;  %v504_v29 = vpop.f32.mrb[0].mxu1 }
 0x1e1   :  { %v436_v30 = vpop.f32.mrb[5].mxu0  ;;  %v506_v31 = vpop.f32.mrb[1].mxu1  ;;  %v788_v34 = vmax.f32 %v434_v28, 0.0  ;;  %v816_v35 = vmax.f32 %v504_v29, 0.0 }
 0x1e2   :  { %v438_v32 = vpop.f32.mrb[6].mxu0  ;;  %v508_v33 = vpop.f32.mrb[2].mxu1  ;;  %v789_v38 = vmax.f32 %v436_v30, 0.0  ;;  %v817_v42 = vmax.f32 %v506_v31, 0.0 }
 0x1e3   :  { %v440_v36 = vpop.f32.mrb[7].mxu0  ;;  %v510_v37 = vpop.f32.mrb[3].mxu1  ;;  %v852_v39 = vadd.f32 1.0, %v788_v34  ;;  %v855_v40 = vmul.f32 -0.5, %v788_v34  ;;  %v1104_v41 = vadd.f32 1.0, %v816_v35  ;;  %v1107_v43 = vmul.f32 -0.5, %v816_v35 }
 0x1e4   :  { %v861_v44 = vadd.f32 1.0, %v789_v38  ;;  %v858_v45 = vand.u32 2147483647, %v788_v34  ;;  %v1110_v47 = vand.u32 2147483647, %v816_v35  ;;  %v864_v48 = vmul.f32 -0.5, %v789_v38 }
 0x1e5   :  { %1577 = vlog2.f32 %v852_v39  ;;  %v856_v46 = vadd.f32 1.0, %v855_v40  ;;  %v867_v51 = vand.u32 2147483647, %v789_v38  ;;  %v1113_v52 = vadd.f32 1.0, %v817_v42 }
 0x1e6   :  { %1579 = vlog2.f32 %v1104_v41  ;;  %v1108_v55 = vadd.f32 1.0, %v1107_v43  ;;  %v1116_v56 = vmul.f32 -0.5, %v817_v42  ;;  %v1119_v57 = vand.u32 2147483647, %v817_v42 }
 0x1e7   :  { %1581 = vlog2.f32 %v861_v44  ;;  %v790_v60 = vmax.f32 %v438_v32, 0.0  ;;  %v818_v61 = vmax.f32 %v508_v33, 0.0  ;;  %v1884_v62 = vmax.f32 %v440_v36, 0.0 }
 0x1e8   :  { %v444_v49 = vpop.f32.mrb[8].mxu0  ;;  %v1874_v50 = vpop.f32.mrb[4].mxu1  ;;  %1583 = vlog2.f32 %v1113_v52  ;;  %v857_v1 = vmul.f32 %v856_v46, %v788_v34  ;;  %vm1890_vm1 = vcmp.lt.f32.partialorder %v858_v45, 0.0004427343  ;;  %vm1894_vm2 = vcmp.lt.f32.partialorder %v1110_v47, 0.0004427343 }
 0x1e9   :  { %v1876_v53 = vpop.f32.mrb[9].mxu0  ;;  %v1878_v54 = vpop.f32.mrb[5].mxu1  ;;  %v865_v4 = vadd.f32 1.0, %v864_v48  ;;  %v870_v5 = vadd.f32 1.0, %v790_v60  ;;  %v876_v6 = vand.u32 2147483647, %v790_v60  ;;  %v1109_v13 = vmul.f32 %v1108_v55, %v816_v35 }
 0x1ea   :  { %v1880_v58 = vpop.f32.mrb[10].mxu0  ;;  %v1882_v59 = vpop.f32.mrb[6].mxu1  ;;  %v1122_v7 = vadd.f32 1.0, %v818_v61  ;;  %v1898_v8 = vmax.f32 %v510_v37, 0.0  ;;  %vm1900_vm3 = vcmp.lt.f32.partialorder %v867_v51, 0.0004427343 }
 0x1eb   :  { %v1886_v63 = vpop.f32.mrb[11].mxu0  ;;  %v1888_v0 = vpop.f32.mrb[7].mxu1  ;;  %v1117_v10 = vadd.f32 1.0, %v1116_v56  ;;  %v873_v11 = vmul.f32 -0.5, %v790_v60  ;;  %v879_v12 = vadd.f32 1.0, %v1884_v62  ;;  %1585 = vlog2.f32 %v870_v5 }
 0x1ec   :  { %vm1905_vm4 = vcmp.lt.f32.partialorder %v1119_v57, 0.0004427343  ;;  %v1125_v15 = vmul.f32 -0.5, %v818_v61  ;;  %1587 = vlog2.f32 %v1122_v7  ;;  %v1128_v16 = vand.u32 2147483647, %v818_v61 }
 0x1ed   :  { %v882_v17 = vmul.f32 -0.5, %v1884_v62  ;;  %v866_v20 = vmul.f32 %v865_v4, %v789_v38  ;;  %vm1912_vm5 = vcmp.lt.f32.partialorder %v876_v6, 0.0004427343  ;;  %1589 = vlog2.f32 %v879_v12 }
 0x1ee   :  { %v1131_v22 = vadd.f32 1.0, %v1898_v8  ;;  %v1118_v27 = vmul.f32 %v1117_v10, %v817_v42  ;;  %v874_v28 = vadd.f32 1.0, %v873_v11  ;;  %v885_v29 = vand.u32 2147483647, %v1884_v62 }
 0x1ef   :  { %v1578_v19 = vpop.eup %1577  ;;  %v1126_v33 = vadd.f32 1.0, %v1125_v15  ;;  %v1134_v34 = vmul.f32 -0.5, %v1898_v8  ;;  %v883_v39 = vadd.f32 1.0, %v882_v17  ;;  %v1931_v40 = vmax.f32 %v444_v49, 0.0 }
 0x1f0   :  { %v1910_v18 = vpop.f32.mrb[12].mxu0  ;;  %v1917_v23 = vpop.f32.mrb[8].mxu1  ;;  %v854_v26 = vmul.f32 0.6931472, %v1578_v19  ;;  %1591 = vlog2.f32 %v1131_v22  ;;  %vm1939_vm6 = vcmp.lt.f32.partialorder %v1128_v16, 0.0004427343  ;;  %v875_v48 = vmul.f32 %v874_v28, %v790_v60 }
 0x1f1   :  { %v1919_v24 = vpop.f32.mrb[13].mxu0  ;;  %v1580_v25 = vpop.eup %1579  ;;  %v888_v49 = vadd.f32 1.0, %v1931_v40  ;;  %v1127_v51 = vmul.f32 %v1126_v33, %v818_v61  ;;  %v1135_v52 = vadd.f32 1.0, %v1134_v34  ;;  %v820_v55 = vmax.f32 %v1874_v50, 0.0 }
 0x1f2   :  { %v1922_v30 = vpop.f32.mrb[9].mxu1  ;;  %v1582_v31 = vpop.eup %1581  ;;  %v1106_v32 = vmul.f32 0.6931472, %v1580_v25  ;;  %v860_v37 = vsel %vm1890_vm1, %v857_v1, %v854_v26  ;;  %v1948_v56 = vmax.f32 %v1876_v53, 0.0  ;;  %v884_v1 = vmul.f32 %v883_v39, %v1884_v62 }
 0x1f3   :  { %v1925_v35 = vpop.f32.mrb[14].mxu0  ;;  %v1927_v36 = vpop.f32.mrb[10].mxu1  ;;  %v863_v38 = vmul.f32 0.6931472, %v1582_v31  ;;  %1428 = vst [vmem:[#allocation7] sm:$0xff] %v860_v37  ;;  %1593 = vlog2.f32 %v888_v49  ;;  %v891_v53 = vmul.f32 -0.5, %v1931_v40  ;;  %v1136_v12 = vmul.f32 %v1135_v52, %v1898_v8 }
 0x1f4   :  { %v1933_v41 = vpop.f32.mrb[15].mxu0  ;;  %v1935_v42 = vpop.f32.mrb[11].mxu1  ;;  %v1112_v44 = vsel %vm1894_vm2, %v1109_v13, %v1106_v32  ;;  %vm1953_vm7 = vcmp.lt.f32.partialorder %v885_v29, 0.0004427343  ;;  %v1137_v50 = vand.u32 2147483647, %v1898_v8 }
 0x1f5   :  { %v1584_v43 = vpop.eup %1583  ;;  %1456 = vst [vmem:[#allocation7 + $0xe0] sm:$0xff] %v1112_v44  ;;  %v869_v46 = vsel %vm1900_vm3, %v866_v20, %v863_v38  ;;  %v1140_v4 = vadd.f32 1.0, %v820_v55  ;;  %v1143_v5 = vmul.f32 -0.5, %v820_v55  ;;  %v897_v9 = vadd.f32 1.0, %v1948_v56 }
 0x1f6   :  { %v1115_v47 = vmul.f32 0.6931472, %v1584_v43  ;;  %1429 = vst [vmem:[#allocation7 + $0x8] sm:$0xff] %v869_v46  ;;  %v1586_v61 = vpop.eup %1585  ;;  %v894_v13 = vand.u32 2147483647, %v1931_v40  ;;  %v900_v19 = vmul.f32 -0.5, %v1948_v56 }
 0x1f7   :  { %v1588_v62 = vpop.eup %1587  ;;  %v872_v7 = vmul.f32 0.6931472, %v1586_v61  ;;  %1595 = vlog2.f32 %v1140_v4  ;;  %v892_v26 = vadd.f32 1.0, %v891_v53  ;;  %v1146_v28 = vand.u32 2147483647, %v820_v55 }
 0x1f8   :  { %v1121_v57 = vsel %vm1905_vm4, %v1118_v27, %v1115_v47  ;;  %v1957_v60 = vpop.f32.mrb[16].mxu0  ;;  %v1959_v3 = vpop.f32.mrb[12].mxu1  ;;  %v1124_v11 = vmul.f32 0.6931472, %v1588_v62  ;;  %1597 = vlog2.f32 %v897_v9  ;;  %v1144_v27 = vadd.f32 1.0, %v1143_v5 }
 0x1f9   :  { %1457 = vst [vmem:[#allocation7 + $0xe8] sm:$0xff] %v1121_v57  ;;  %v1963_v6 = vpop.f32.mrb[17].mxu0  ;;  %v1590_v10 = vpop.eup %1589  ;;  %v878_v16 = vsel %vm1912_vm5, %v875_v48, %v872_v7  ;;  %v1986_v32 = vmax.f32 %v1878_v54, 0.0  ;;  %v1989_v33 = vmax.f32 %v1880_v58, 0.0  ;;  %vm1138_vm8 = vcmp.lt.f32.partialorder %v1137_v50, 0.0004427343 }
 0x1fa   :  { %v1968_v14 = vpop.f32.mrb[13].mxu1  ;;  %v1970_v15 = vpop.f32.mrb[18].mxu0  ;;  %v881_v17 = vmul.f32 0.6931472, %v1590_v10  ;;  %1430 = vst [vmem:[#allocation7 + $0x10] sm:$0xff] %v878_v16  ;;  %v1130_v8 = vsel %vm1939_vm6, %v1127_v51, %v1124_v11  ;;  %v901_v39 = vadd.f32 1.0, %v900_v19  ;;  %v893_v54 = vmul.f32 %v892_v26, %v1931_v40 }
 0x1fb   :  { %v1975_v20 = vpop.f32.mrb[14].mxu1  ;;  %v1977_v22 = vpop.f32.mrb[19].mxu0  ;;  %1458 = vst [vmem:[#allocation7 + $0xf0] sm:$0xff] %v1130_v8  ;;  %v903_v34 = vand.u32 2147483647, %v1948_v56  ;;  %v1149_v43 = vadd.f32 1.0, %v1986_v32  ;;  %v1145_v51 = vmul.f32 %v1144_v27, %v820_v55 }
 0x1fc   :  { %v1592_v25 = vpop.eup %1591  ;;  %v1981_v29 = vpop.f32.mrb[15].mxu1  ;;  %v887_v21 = vsel %vm1953_vm7, %v884_v1, %v881_v17  ;;  %vm1992_vm9 = vcmp.lt.f32.partialorder %v894_v13, 0.0004427343  ;;  %vm2002_vm10 = vcmp.lt.f32.partialorder %v1146_v28, 0.0004427343  ;;  %v906_v46 = vadd.f32 1.0, %v1989_v33 }
 0x1fd   :  { %v1133_v31 = vmul.f32 0.6931472, %v1592_v25  ;;  %1431 = vst [vmem:[#allocation7 + $0x18] sm:$0xff] %v887_v21  ;;  %v822_v47 = vmax.f32 %v1882_v59, 0.0  ;;  %v1594_v49 = vpop.eup %1593  ;;  %1599 = vlog2.f32 %v1149_v43  ;;  %v1152_v52 = vmul.f32 -0.5, %v1986_v32 }
 0x1fe   :  { %v2012_v57 = vmax.f32 %v1886_v63, 0.0  ;;  %v890_v2 = vmul.f32 0.6931472, %v1594_v49  ;;  %vm2018_vm11 = vcmp.lt.f32.partialorder %v903_v34, 0.0004427343  ;;  %1601 = vlog2.f32 %v906_v46 }
 0x1ff   :  { %v1139_v37 = vsel %vm1138_vm8, %v1136_v12, %v1133_v31  ;;  %v909_v59 = vmul.f32 -0.5, %v1989_v33  ;;  %v902_v55 = vmul.f32 %v901_v39, %v1948_v56  ;;  %v1155_v53 = vand.u32 2147483647, %v1986_v32 }
 0x200   :  { %v1997_v44 = vpop.f32.mrb[20].mxu0  ;;  %v1999_v45 = vpop.f32.mrb[16].mxu1  ;;  %1459 = vst [vmem:[#allocation7 + $0xf8] sm:$0xff] %v1139_v37  ;;  %v1158_v63 = vadd.f32 1.0, %v822_v47  ;;  %v1161_v4 = vmul.f32 -0.5, %v822_v47  ;;  %v896_v9 = vsel %vm1992_vm9, %v893_v54, %v890_v2  ;;  %v915_v11 = vadd.f32 1.0, %v2012_v57 }
 0x201   :  { %v2008_v48 = vpop.f32.mrb[21].mxu0  ;;  %v2014_v1 = vpop.f32.mrb[17].mxu1  ;;  %v912_v10 = vand.u32 2147483647, %v1989_v33  ;;  %v918_v12 = vmul.f32 -0.5, %v2012_v57  ;;  %1432 = vst [vmem:[#allocation7 + $0x20] sm:$0xff] %v896_v9 }
 0x202   :  { %v2016_v40 = vpop.f32.mrb[22].mxu0  ;;  %v2023_v50 = vpop.f32.mrb[18].mxu1  ;;  %v1153_v16 = vadd.f32 1.0, %v1152_v52  ;;  %1603 = vlog2.f32 %v1158_v63  ;;  %v1164_v17 = vand.u32 2147483647, %v822_v47  ;;  %v910_v25 = vadd.f32 1.0, %v909_v59 }
 0x203   :  { %v2027_v5 = vpop.f32.mrb[23].mxu0  ;;  %v2029_v62 = vpop.f32.mrb[19].mxu1  ;;  %v1162_v8 = vadd.f32 1.0, %v1161_v4  ;;  %1605 = vlog2.f32 %v915_v11  ;;  %v919_v27 = vadd.f32 1.0, %v918_v12  ;;  %vm2044_vm12 = vcmp.lt.f32.partialorder %v1155_v53, 0.0004427343 }
 0x204   :  { %v1596_v7 = vpop.eup %1595  ;;  %vm2048_vm13 = vcmp.lt.f32.partialorder %v912_v10, 0.0004427343  ;;  %vm2056_vm14 = vcmp.lt.f32.partialorder %v1164_v17, 0.0004427343  ;;  %v2061_v54 = vmax.f32 %v1888_v0, 0.0  ;;  %v2064_v58 = vmax.f32 %v1910_v18, 0.0 }
 0x205   :  { %v1598_v13 = vpop.eup %1597  ;;  %v1142_v56 = vmul.f32 0.6931472, %v1596_v7  ;;  %v911_v52 = vmul.f32 %v910_v25, %v1989_v33  ;;  %v921_v2 = vand.u32 2147483647, %v2012_v57  ;;  %v2074_v61 = vmax.f32 %v1917_v23, 0.0 }
 0x206   :  { %v899_v19 = vmul.f32 0.6931472, %v1598_v13  ;;  %v1163_v18 = vmul.f32 %v1162_v8, %v822_v47  ;;  %v920_v53 = vmul.f32 %v919_v27, %v2012_v57  ;;  %v1167_v63 = vadd.f32 1.0, %v2061_v54 }
 0x207   :  { %v1148_v26 = vsel %vm2002_vm10, %v1145_v51, %v1142_v56  ;;  %v1154_v51 = vmul.f32 %v1153_v16, %v1986_v32  ;;  %v924_v4 = vadd.f32 1.0, %v2064_v58  ;;  %v1176_v33 = vadd.f32 1.0, %v2074_v61 }
 0x208   :  { %v2038_v28 = vpop.f32.mrb[24].mxu0  ;;  %v2040_v21 = vpop.f32.mrb[20].mxu1  ;;  %1460 = vst [vmem:[#allocation7 + $0x100] sm:$0xff] %v1148_v26  ;;  %v905_v31 = vsel %vm2018_vm11, %v902_v55, %v899_v19  ;;  %1607 = vlog2.f32 %v1167_v63  ;;  %v1170_v23 = vmul.f32 -0.5, %v2061_v54  ;;  %vm2087_vm15 = vcmp.lt.f32.partialorder %v921_v2, 0.0004427343 }
 0x209   :  { %v2052_v38 = vpop.f32.mrb[25].mxu0  ;;  %v2054_v39 = vpop.f32.mrb[21].mxu1  ;;  %1433 = vst [vmem:[#allocation7 + $0x28] sm:$0xff] %v905_v31  ;;  %1609 = vlog2.f32 %v924_v4  ;;  %v927_v47 = vmul.f32 -0.5, %v2064_v58  ;;  %v1173_v13 = vand.u32 2147483647, %v2061_v54 }
 0x20a   :  { %v2066_v46 = vpop.f32.mrb[26].mxu0  ;;  %v2068_v49 = vpop.f32.mrb[22].mxu1  ;;  %v930_v56 = vand.u32 2147483647, %v2064_v58  ;;  %1611 = vlog2.f32 %v1176_v33  ;;  %v1179_v8 = vmul.f32 -0.5, %v2074_v61  ;;  %v797_v26 = vmax.f32 %v1919_v24, 0.0 }
 0x20b   :  { %v2076_v59 = vpop.f32.mrb[27].mxu0  ;;  %v2078_v0 = vpop.f32.mrb[23].mxu1  ;;  %v1171_v34 = vadd.f32 1.0, %v1170_v23  ;;  %v825_v37 = vmax.f32 %v1922_v30, 0.0  ;;  %v1182_v63 = vand.u32 2147483647, %v2074_v61 }
 0x20c   :  { %v1600_v55 = vpop.eup %1599  ;;  %v933_v4 = vadd.f32 1.0, %v797_v26  ;;  %vm2119_vm0 = vcmp.lt.f32.partialorder %v1173_v13, 0.0004427343  ;;  %v939_v23 = vand.u32 2147483647, %v797_v26 }
 0x20d   :  { %v1602_v32 = vpop.eup %1601  ;;  %v1151_v7 = vmul.f32 0.6931472, %v1600_v55  ;;  %v928_v55 = vadd.f32 1.0, %v927_v47  ;;  %vm2127_vm1 = vcmp.lt.f32.partialorder %v930_v56, 0.0004427343  ;;  %v1172_v47 = vmul.f32 %v1171_v34, %v2061_v54 }
 0x20e   :  { %v908_v9 = vmul.f32 0.6931472, %v1602_v32  ;;  %v1604_v57 = vpop.eup %1603  ;;  %1613 = vlog2.f32 %v933_v4  ;;  %vm2134_vm2 = vcmp.lt.f32.partialorder %v1182_v63, 0.0004427343  ;;  %v1191_v13 = vand.u32 2147483647, %v825_v37 }
 0x20f   :  { %v1157_v10 = vsel %vm2044_vm12, %v1154_v51, %v1151_v7  ;;  %v1606_v19 = vpop.eup %1605  ;;  %v1160_v25 = vmul.f32 0.6931472, %v1604_v57  ;;  %v2106_v51 = vmax.f32 %v1925_v35, 0.0  ;;  %v1185_v7 = vadd.f32 1.0, %v825_v37 }
 0x210   :  { %1461 = vst [vmem:[#allocation7 + $0x108] sm:$0xff] %v1157_v10  ;;  %v914_v12 = vsel %vm2048_vm13, %v911_v52, %v908_v9  ;;  %v2096_v16 = vpop.f32.mrb[28].mxu0  ;;  %v2098_v17 = vpop.f32.mrb[24].mxu1  ;;  %v917_v31 = vmul.f32 0.6931472, %v1606_v19  ;;  %v936_v9 = vmul.f32 -0.5, %v797_v26  ;;  %v929_v57 = vmul.f32 %v928_v55, %v2064_v58 }
 0x211   :  { %1434 = vst [vmem:[#allocation7 + $0x30] sm:$0xff] %v914_v12  ;;  %v2102_v27 = vpop.f32.mrb[29].mxu0  ;;  %v2108_v52 = vpop.f32.mrb[25].mxu1  ;;  %v1166_v2 = vsel %vm2056_vm14, %v1163_v18, %v1160_v25  ;;  %v1180_v18 = vadd.f32 1.0, %v1179_v8  ;;  %1615 = vlog2.f32 %v1185_v7  ;;  %v942_v11 = vadd.f32 1.0, %v2106_v51 }
 0x212   :  { %v2113_v32 = vpop.f32.mrb[30].mxu0  ;;  %v2115_v24 = vpop.f32.mrb[26].mxu1  ;;  %1462 = vst [vmem:[#allocation7 + $0x110] sm:$0xff] %v1166_v2  ;;  %v923_v30 = vsel %vm2087_vm15, %v920_v53, %v917_v31  ;;  %v1188_v53 = vmul.f32 -0.5, %v825_v37  ;;  %v945_v56 = vmul.f32 -0.5, %v2106_v51  ;;  %v2140_v25 = vmax.f32 %v1927_v36, 0.0 }
 0x213   :  { %v2123_v33 = vpop.f32.mrb[31].mxu0  ;;  %v2125_v43 = vpop.f32.mrb[27].mxu1  ;;  %1435 = vst [vmem:[#allocation7 + $0x38] sm:$0xff] %v923_v30  ;;  %1617 = vlog2.f32 %v942_v11  ;;  %v2143_v8 = vmax.f32 %v1933_v41, 0.0  ;;  %v1181_v58 = vmul.f32 %v1180_v18, %v2074_v61  ;;  %v937_v2 = vadd.f32 1.0, %v936_v9 }
 0x214   :  { %v1608_v19 = vpop.eup %1607  ;;  %vm2148_vm3 = vcmp.lt.f32.partialorder %v939_v23, 0.0004427343  ;;  %v1189_v36 = vadd.f32 1.0, %v1188_v53  ;;  %v1194_v7 = vadd.f32 1.0, %v2140_v25  ;;  %v948_v61 = vand.u32 2147483647, %v2106_v51 }
 0x215   :  { %v1610_v54 = vpop.eup %1609  ;;  %v1169_v34 = vmul.f32 0.6931472, %v1608_v19  ;;  %v951_v18 = vadd.f32 1.0, %v2143_v8  ;;  %v1197_v53 = vmul.f32 -0.5, %v2140_v25  ;;  %vm2169_vm4 = vcmp.lt.f32.partialorder %v1191_v13, 0.0004427343 }
 0x216   :  { %v1612_v4 = vpop.eup %1611  ;;  %v926_v30 = vmul.f32 0.6931472, %v1610_v54  ;;  %v946_v54 = vadd.f32 1.0, %v945_v56  ;;  %1619 = vlog2.f32 %v1194_v7  ;;  %v827_v10 = vmax.f32 %v1935_v42, 0.0 }
 0x217   :  { %v1175_v11 = vsel %vm2119_vm0, %v1172_v47, %v1169_v34  ;;  %v1178_v19 = vmul.f32 0.6931472, %v1612_v4  ;;  %v938_v47 = vmul.f32 %v937_v2, %v797_v26  ;;  %1621 = vlog2.f32 %v951_v18 }
 0x218   :  { %v2145_v31 = vpop.f32.mrb[28].mxu1  ;;  %1463 = vst [vmem:[#allocation7 + $0x118] sm:$0xff] %v1175_v11  ;;  %v932_v23 = vsel %vm2127_vm1, %v929_v57, %v926_v30  ;;  %v954_v34 = vmul.f32 -0.5, %v2143_v8  ;;  %v1190_v4 = vmul.f32 %v1189_v36, %v825_v37  ;;  %v1614_v57 = vpop.eup %1613  ;;  %vm2174_vm5 = vcmp.lt.f32.partialorder %v948_v61, 0.0004427343 }
 0x219   :  { %v2152_v63 = vpop.f32.mrb[29].mxu1  ;;  %1436 = vst [vmem:[#allocation7 + $0x40] sm:$0xff] %v932_v23  ;;  %v1184_v35 = vsel %vm2134_vm2, %v1181_v58, %v1178_v19  ;;  %v1200_v12 = vand.u32 2147483647, %v2140_v25  ;;  %v935_v26 = vmul.f32 0.6931472, %v1614_v57  ;;  %v947_v2 = vmul.f32 %v946_v54, %v2106_v51 }
 0x21a   :  { %v2155_v41 = vpop.f32.mrb[30].mxu1  ;;  %1464 = vst [vmem:[#allocation7 + $0x120] sm:$0xff] %v1184_v35  ;;  %v1198_v30 = vadd.f32 1.0, %v1197_v53  ;;  %v1203_v7 = vadd.f32 1.0, %v827_v10  ;;  %v955_v36 = vadd.f32 1.0, %v954_v34  ;;  %v800_v11 = vmax.f32 %v1957_v60, 0.0 }
 0x21b   :  { %v2161_v9 = vpop.f32.mrb[31].mxu1  ;;  %v1616_v58 = vpop.eup %1615  ;;  %v828_v42 = vmax.f32 %v1959_v3, 0.0  ;;  %v941_v61 = vsel %vm2148_vm3, %v938_v47, %v935_v26  ;;  %v1206_v18 = vmul.f32 -0.5, %v827_v10  ;;  %v2187_v23 = vmax.f32 %v1963_v6, 0.0 }
 0x21c   :  { %2583 = vst [vmem:[#allocation11_spill] sm:$0xff] %v2161_v9  ;;  %v1187_v13 = vmul.f32 0.6931472, %v1616_v58  ;;  %1623 = vlog2.f32 %v1203_v7  ;;  %1437 = vst [vmem:[#allocation7 + $0x48] sm:$0xff] %v941_v61  ;;  %v957_v60 = vand.u32 2147483647, %v2143_v8  ;;  %v956_v58 = vmul.f32 %v955_v36, %v2143_v8 }
 0x21d   :  { %v1618_v19 = vpop.eup %1617  ;;  %v960_v35 = vadd.f32 1.0, %v800_v11  ;;  %vm2196_vm6 = vcmp.lt.f32.partialorder %v1200_v12, 0.0004427343  ;;  %v963_v47 = vmul.f32 -0.5, %v800_v11  ;;  %v1212_v6 = vadd.f32 1.0, %v828_v42 }
 0x21e   :  { %v1193_v54 = vsel %vm2169_vm4, %v1190_v4, %v1187_v13  ;;  %v944_v53 = vmul.f32 0.6931472, %v1618_v19  ;;  %v1209_v9 = vand.u32 2147483647, %v827_v10  ;;  %v1207_v26 = vadd.f32 1.0, %v1206_v18 }
 0x21f   :  { %1465 = vst [vmem:[#allocation7 + $0x128] sm:$0xff] %v1193_v54  ;;  %1625 = vlog2.f32 %v960_v35  ;;  %v969_v12 = vadd.f32 1.0, %v2187_v23  ;;  %v1199_v19 = vmul.f32 %v1198_v30, %v2140_v25  ;;  %vm958_vm7 = vcmp.lt.f32.partialorder %v957_v60, 0.0004427343 }
 0x220   :  { %v2180_v37 = vpop.f32.mrb[32].mxu1  ;;  %v950_v57 = vsel %vm2174_vm5, %v947_v2, %v944_v53  ;;  %v1620_v4 = vpop.eup %1619  ;;  %1627 = vlog2.f32 %v1212_v6  ;;  %v1215_v61 = vmul.f32 -0.5, %v828_v42  ;;  %v966_v56 = vand.u32 2147483647, %v800_v11 }
 0x221   :  { %v2189_v51 = vpop.f32.mrb[33].mxu1  ;;  %1438 = vst [vmem:[#allocation7 + $0x50] sm:$0xff] %v950_v57  ;;  %v1622_v7 = vpop.eup %1621  ;;  %v1196_v13 = vmul.f32 0.6931472, %v1620_v4  ;;  %1629 = vlog2.f32 %v969_v12  ;;  %vm2209_vm8 = vcmp.lt.f32.partialorder %v1209_v9, 0.0004427343  ;;  %v1208_v25 = vmul.f32 %v1207_v26, %v827_v10 }
 0x222   :  { %v2194_v3 = vpop.f32.mrb[34].mxu1  ;;  %v953_v54 = vmul.f32 0.6931472, %v1622_v7  ;;  %v972_v8 = vmul.f32 -0.5, %v2187_v23  ;;  %v829_v36 = vmax.f32 %v1968_v14, 0.0  ;;  %v1216_v30 = vadd.f32 1.0, %v1215_v61 }
 0x223   :  { %v2200_v34 = vpop.f32.mrb[35].mxu1  ;;  %v1202_v2 = vsel %vm2196_vm6, %v1199_v19, %v1196_v13  ;;  %v1218_v60 = vand.u32 2147483647, %v828_v42  ;;  %v975_v35 = vand.u32 2147483647, %v2187_v23  ;;  %v802_v9 = vmax.f32 %v1970_v15, 0.0 }
 0x224   :  { %2590 = vst [vmem:[#allocation12_spill] sm:$0xff] %v2200_v34  ;;  %v964_v34 = vadd.f32 1.0, %v963_v47  ;;  %1466 = vst [vmem:[#allocation7 + $0x130] sm:$0xff] %v1202_v2  ;;  %v959_v18 = vsel %vm958_vm7, %v956_v58, %v953_v54  ;;  %v1221_v47 = vadd.f32 1.0, %v829_v36  ;;  %vm2216_vm9 = vcmp.lt.f32.partialorder %v966_v56, 0.0004427343 }
 0x225   :  { %1439 = vst [vmem:[#allocation7 + $0x58] sm:$0xff] %v959_v18  ;;  %v2222_v4 = vmax.f32 %v1975_v20, 0.0  ;;  %v973_v58 = vadd.f32 1.0, %v972_v8  ;;  %v1224_v10 = vmul.f32 -0.5, %v829_v36  ;;  %v978_v26 = vadd.f32 1.0, %v802_v9 }
 0x226   :  { %v1624_v6 = vpop.eup %1623  ;;  %v965_v55 = vmul.f32 %v964_v34, %v800_v11  ;;  %1631 = vlog2.f32 %v1221_v47  ;;  %v1217_v34 = vmul.f32 %v1216_v30, %v828_v42  ;;  %vm2227_vm10 = vcmp.lt.f32.partialorder %v1218_v60, 0.0004427343 }
 0x227   :  { %v1205_v14 = vmul.f32 0.6931472, %v1624_v6  ;;  %v1230_v12 = vadd.f32 1.0, %v2222_v4  ;;  %vm2231_vm11 = vcmp.lt.f32.partialorder %v975_v35, 0.0004427343  ;;  %1633 = vlog2.f32 %v978_v26 }
 0x228   :  { %v981_v61 = vmul.f32 -0.5, %v802_v9  ;;  %v1233_v54 = vmul.f32 -0.5, %v2222_v4  ;;  %v974_v2 = vmul.f32 %v973_v58, %v2187_v23  ;;  %v1227_v53 = vand.u32 2147483647, %v829_v36 }
 0x229   :  { %v1626_v7 = vpop.eup %1625  ;;  %v1211_v11 = vsel %vm2209_vm8, %v1208_v25, %v1205_v14  ;;  %1635 = vlog2.f32 %v1230_v12  ;;  %v1225_v18 = vadd.f32 1.0, %v1224_v10  ;;  %v803_v25 = vmax.f32 %v1977_v22, 0.0 }
 0x22a   :  { %v1628_v20 = vpop.eup %1627  ;;  %1467 = vst [vmem:[#allocation7 + $0x138] sm:$0xff] %v1211_v11  ;;  %v962_v19 = vmul.f32 0.6931472, %v1626_v7  ;;  %v831_v30 = vmax.f32 %v1981_v29, 0.0  ;;  %v984_v47 = vand.u32 2147483647, %v802_v9 }
 0x22b   :  { %v1214_v56 = vmul.f32 0.6931472, %v1628_v20  ;;  %v1630_v42 = vpop.eup %1629  ;;  %v982_v6 = vadd.f32 1.0, %v981_v61  ;;  %v1234_v23 = vadd.f32 1.0, %v1233_v54  ;;  %v987_v14 = vadd.f32 1.0, %v803_v25 }
 0x22c   :  { %v968_v8 = vsel %vm2216_vm9, %v965_v55, %v962_v19  ;;  %v971_v35 = vmul.f32 0.6931472, %v1630_v42  ;;  %v1239_v58 = vadd.f32 1.0, %v831_v30  ;;  %vm2245_vm12 = vcmp.lt.f32.partialorder %v1227_v53, 0.0004427343 }
 0x22d   :  { %1440 = vst [vmem:[#allocation7 + $0x60] sm:$0xff] %v968_v8  ;;  %v1220_v60 = vsel %vm2227_vm10, %v1217_v34, %v1214_v56  ;;  %v804_v22 = vmax.f32 %v1997_v44, 0.0  ;;  %v1226_v29 = vmul.f32 %v1225_v18, %v829_v36  ;;  %v1236_v10 = vand.u32 2147483647, %v2222_v4 }
 0x22e   :  { %1468 = vst [vmem:[#allocation7 + $0x140] sm:$0xff] %v1220_v60  ;;  %v977_v57 = vsel %vm2231_vm11, %v974_v2, %v971_v35  ;;  %1637 = vlog2.f32 %v987_v14  ;;  %v990_v12 = vmul.f32 -0.5, %v803_v25  ;;  %v1242_v7 = vmul.f32 -0.5, %v831_v30 }
 0x22f   :  { %1441 = vst [vmem:[#allocation7 + $0x68] sm:$0xff] %v977_v57  ;;  %1639 = vlog2.f32 %v1239_v58  ;;  %v996_v11 = vadd.f32 1.0, %v804_v22  ;;  %v983_v13 = vmul.f32 %v982_v6, %v802_v9  ;;  %vm2251_vm13 = vcmp.lt.f32.partialorder %v984_v47, 0.0004427343 }
 0x230   :  { %v1632_v26 = vpop.eup %1631  ;;  %v1235_v20 = vmul.f32 %v1234_v23, %v2222_v4  ;;  %v999_v44 = vmul.f32 -0.5, %v804_v22  ;;  %v2257_v36 = vmax.f32 %v1999_v45, 0.0  ;;  %v993_v54 = vand.u32 2147483647, %v803_v25 }
 0x231   :  { %v1223_v34 = vmul.f32 0.6931472, %v1632_v26  ;;  %1641 = vlog2.f32 %v996_v11  ;;  %v1634_v19 = vpop.eup %1633  ;;  %v1245_v56 = vand.u32 2147483647, %v831_v30  ;;  %v991_v53 = vadd.f32 1.0, %v990_v12 }
 0x232   :  { %v980_v9 = vmul.f32 0.6931472, %v1634_v19  ;;  %v1243_v42 = vadd.f32 1.0, %v1242_v7  ;;  %v1248_v8 = vadd.f32 1.0, %v2257_v36  ;;  %v1002_v4 = vand.u32 2147483647, %v804_v22 }
 0x233   :  { %v1229_v61 = vsel %vm2245_vm12, %v1226_v29, %v1223_v34  ;;  %v1636_v2 = vpop.eup %1635  ;;  %v805_v60 = vmax.f32 %v2008_v48, 0.0  ;;  %v2264_v45 = vmax.f32 %v2014_v1, 0.0  ;;  %vm1237_vm14 = vcmp.lt.f32.partialorder %v1236_v10, 0.0004427343 }
 0x234   :  { %1469 = vst [vmem:[#allocation7 + $0x148] sm:$0xff] %v1229_v61  ;;  %v1232_v18 = vmul.f32 0.6931472, %v1636_v2  ;;  %v986_v35 = vsel %vm2251_vm13, %v983_v13, %v980_v9  ;;  %v1000_v47 = vadd.f32 1.0, %v999_v44  ;;  %1643 = vlog2.f32 %v1248_v8 }
 0x235   :  { %1442 = vst [vmem:[#allocation7 + $0x70] sm:$0xff] %v986_v35  ;;  %vm2268_vm15 = vcmp.lt.f32.partialorder %v993_v54, 0.0004427343  ;;  %v1251_v14 = vmul.f32 -0.5, %v2257_v36  ;;  %v1005_v58 = vadd.f32 1.0, %v805_v60  ;;  %v992_v48 = vmul.f32 %v991_v53, %v803_v25 }
 0x236   :  { %v1238_v6 = vsel %vm1237_vm14, %v1235_v20, %v1232_v18  ;;  %v1244_v57 = vmul.f32 %v1243_v42, %v831_v30  ;;  %vm2273_vm0 = vcmp.lt.f32.partialorder %v1245_v56, 0.0004427343  ;;  %v1257_v55 = vadd.f32 1.0, %v2264_v45 }
 0x237   :  { %1470 = vst [vmem:[#allocation7 + $0x150] sm:$0xff] %v1238_v6  ;;  %vm2278_vm1 = vcmp.lt.f32.partialorder %v1002_v4, 0.0004427343  ;;  %v1254_v26 = vand.u32 2147483647, %v2257_v36  ;;  %1645 = vlog2.f32 %v1005_v58  ;;  %v1001_v11 = vmul.f32 %v1000_v47, %v804_v22 }
 0x238   :  { %v1638_v29 = vpop.eup %1637  ;;  %v1008_v34 = vmul.f32 -0.5, %v805_v60  ;;  %1647 = vlog2.f32 %v1257_v55  ;;  %v1252_v30 = vadd.f32 1.0, %v1251_v14  ;;  %v806_v13 = vmax.f32 %v2016_v40, 0.0 }
 0x239   :  { %v1640_v12 = vpop.eup %1639  ;;  %v989_v7 = vmul.f32 0.6931472, %v1638_v29  ;;  %v1260_v44 = vmul.f32 -0.5, %v2264_v45  ;;  %v1011_v54 = vand.u32 2147483647, %v805_v60  ;;  %v834_v9 = vmax.f32 %v2023_v50, 0.0 }
 0x23a   :  { %v1241_v25 = vmul.f32 0.6931472, %v1640_v12  ;;  %v1014_v56 = vadd.f32 1.0, %v806_v13  ;;  %v1009_v22 = vadd.f32 1.0, %v1008_v34  ;;  %v1263_v2 = vand.u32 2147483647, %v2264_v45 }
 0x23b   :  { %v1642_v15 = vpop.eup %1641  ;;  %v995_v20 = vsel %vm2268_vm15, %v992_v48, %v989_v7  ;;  %v807_v40 = vmax.f32 %v2027_v5, 0.0  ;;  %v1017_v42 = vmul.f32 -0.5, %v806_v13  ;;  %v2295_v8 = vmax.f32 %v2029_v62, 0.0 }
 0x23c   :  { %1443 = vst [vmem:[#allocation7 + $0x78] sm:$0xff] %v995_v20  ;;  %v1247_v19 = vsel %vm2273_vm0, %v1244_v57, %v1241_v25  ;;  %v998_v61 = vmul.f32 0.6931472, %v1642_v15  ;;  %1649 = vlog2.f32 %v1014_v56  ;;  %vm2297_vm2 = vcmp.lt.f32.partialorder %v1254_v26, 0.0004427343 }
 0x23d   :  { %1471 = vst [vmem:[#allocation7 + $0x158] sm:$0xff] %v1247_v19  ;;  %v1261_v35 = vadd.f32 1.0, %v1260_v44  ;;  %v1266_v47 = vadd.f32 1.0, %v834_v9  ;;  %v1253_v50 = vmul.f32 %v1252_v30, %v2257_v36  ;;  %vm2302_vm3 = vcmp.lt.f32.partialorder %v1011_v54, 0.0004427343 }
 0x23e   :  { %v1004_v53 = vsel %vm2278_vm1, %v1001_v11, %v998_v61  ;;  %v1644_v18 = vpop.eup %1643  ;;  %v1023_v23 = vadd.f32 1.0, %v807_v40  ;;  %v1010_v14 = vmul.f32 %v1009_v22, %v805_v60  ;;  %vm2306_vm4 = vcmp.lt.f32.partialorder %v1263_v2, 0.0004427343 }
 0x23f   :  { %1444 = vst [vmem:[#allocation7 + $0x80] sm:$0xff] %v1004_v53  ;;  %v1250_v6 = vmul.f32 0.6931472, %v1644_v18  ;;  %1651 = vlog2.f32 %v1266_v47  ;;  %v1018_v57 = vadd.f32 1.0, %v1017_v42  ;;  %v1275_v1 = vadd.f32 1.0, %v2295_v8 }
 0x240   :  { %1653 = vlog2.f32 %v1023_v23  ;;  %v1262_v29 = vmul.f32 %v1261_v35, %v2264_v45  ;;  %v1269_v10 = vmul.f32 -0.5, %v834_v9  ;;  %v1026_v60 = vmul.f32 -0.5, %v807_v40 }
 0x241   :  { %v1646_v58 = vpop.eup %1645  ;;  %v1256_v48 = vsel %vm2297_vm2, %v1253_v50, %v1250_v6  ;;  %v1020_v12 = vand.u32 2147483647, %v806_v13  ;;  %v1272_v7 = vand.u32 2147483647, %v834_v9  ;;  %1655 = vlog2.f32 %v1275_v1 }
 0x242   :  { %v1648_v36 = vpop.eup %1647  ;;  %1472 = vst [vmem:[#allocation7 + $0x160] sm:$0xff] %v1256_v48  ;;  %v1007_v55 = vmul.f32 0.6931472, %v1646_v58  ;;  %v1278_v34 = vmul.f32 -0.5, %v2295_v8  ;;  %v808_v25 = vmax.f32 %v2038_v28, 0.0  ;;  %v1019_v15 = vmul.f32 %v1018_v57, %v806_v13 }
 0x243   :  { %v1259_v26 = vmul.f32 0.6931472, %v1648_v36  ;;  %v1270_v45 = vadd.f32 1.0, %v1269_v10  ;;  %v1027_v20 = vadd.f32 1.0, %v1026_v60  ;;  %v1029_v44 = vand.u32 2147483647, %v807_v40 }
 0x244   :  { %v1013_v11 = vsel %vm2302_vm3, %v1010_v14, %v1007_v55  ;;  %v1032_v19 = vadd.f32 1.0, %v808_v25  ;;  %vm2320_vm5 = vcmp.lt.f32.partialorder %v1020_v12, 0.0004427343  ;;  %v1281_v56 = vand.u32 2147483647, %v2295_v8 }
 0x245   :  { %1445 = vst [vmem:[#allocation7 + $0x88] sm:$0xff] %v1013_v11  ;;  %v1265_v30 = vsel %vm2306_vm4, %v1262_v29, %v1259_v26  ;;  %v2326_v22 = vmax.f32 %v2040_v21, 0.0  ;;  %v809_v28 = vmax.f32 %v2052_v38, 0.0  ;;  %vm2329_vm6 = vcmp.lt.f32.partialorder %v1272_v7, 0.0004427343 }
 0x246   :  { %1473 = vst [vmem:[#allocation7 + $0x168] sm:$0xff] %v1265_v30  ;;  %v1650_v61 = vpop.eup %1649  ;;  %v1279_v53 = vadd.f32 1.0, %v1278_v34  ;;  %1657 = vlog2.f32 %v1032_v19  ;;  %v1035_v42 = vmul.f32 -0.5, %v808_v25  ;;  %v2335_v35 = vmax.f32 %v2054_v39, 0.0 }
 0x247   :  { %v1016_v2 = vmul.f32 0.6931472, %v1650_v61  ;;  %v1284_v18 = vadd.f32 1.0, %v2326_v22  ;;  %v1041_v4 = vadd.f32 1.0, %v809_v28  ;;  %v1271_v6 = vmul.f32 %v1270_v45, %v834_v9 }
 0x248   :  { %v1028_v38 = vmul.f32 %v1027_v20, %v807_v40  ;;  %vm2339_vm7 = vcmp.lt.f32.partialorder %v1029_v44, 0.0004427343  ;;  %vm2343_vm8 = vcmp.lt.f32.partialorder %v1281_v56, 0.0004427343  ;;  %v1280_v62 = vmul.f32 %v1279_v53, %v2295_v8 }
 0x249   :  { %v1652_v47 = vpop.eup %1651  ;;  %v1022_v21 = vsel %vm2320_vm5, %v1019_v15, %v1016_v2  ;;  %1659 = vlog2.f32 %v1284_v18  ;;  %v1038_v58 = vand.u32 2147483647, %v808_v25  ;;  %v1036_v40 = vadd.f32 1.0, %v1035_v42 }
 0x24a   :  { %v1654_v5 = vpop.eup %1653  ;;  %1446 = vst [vmem:[#allocation7 + $0x90] sm:$0xff] %v1022_v21  ;;  %v1268_v23 = vmul.f32 0.6931472, %v1652_v47  ;;  %1661 = vlog2.f32 %v1041_v4  ;;  %v1044_v57 = vmul.f32 -0.5, %v809_v28  ;;  %v1293_v1 = vadd.f32 1.0, %v2335_v35 }
 0x24b   :  { %v1025_v39 = vmul.f32 0.6931472, %v1654_v5  ;;  %v1656_v48 = vpop.eup %1655  ;;  %v1287_v29 = vmul.f32 -0.5, %v2326_v22  ;;  %v1290_v10 = vand.u32 2147483647, %v2326_v22  ;;  %v810_v60 = vmax.f32 %v2066_v46, 0.0 }
 0x24c   :  { %v1274_v9 = vsel %vm2329_vm6, %v1271_v6, %v1268_v23  ;;  %v1277_v55 = vmul.f32 0.6931472, %v1656_v48  ;;  %v1047_v8 = vand.u32 2147483647, %v809_v28  ;;  %1663 = vlog2.f32 %v1293_v1 }
 0x24d   :  { %1474 = vst [vmem:[#allocation7 + $0x170] sm:$0xff] %v1274_v9  ;;  %v1031_v36 = vsel %vm2339_vm7, %v1028_v38, %v1025_v39  ;;  %vm2358_vm9 = vcmp.lt.f32.partialorder %v1038_v58, 0.0004427343  ;;  %v1037_v7 = vmul.f32 %v1036_v40, %v808_v25  ;;  %v1045_v11 = vadd.f32 1.0, %v1044_v57 }
 0x24e   :  { %1447 = vst [vmem:[#allocation7 + $0x98] sm:$0xff] %v1031_v36  ;;  %v1283_v26 = vsel %vm2343_vm8, %v1280_v62, %v1277_v55  ;;  %v1296_v34 = vmul.f32 -0.5, %v2335_v35  ;;  %v1050_v30 = vadd.f32 1.0, %v810_v60  ;;  %v1288_v45 = vadd.f32 1.0, %v1287_v29 }
 0x24f   :  { %1475 = vst [vmem:[#allocation7 + $0x178] sm:$0xff] %v1283_v26  ;;  %v1053_v20 = vmul.f32 -0.5, %v810_v60  ;;  %v2364_v44 = vmax.f32 %v2068_v49, 0.0  ;;  %v811_v46 = vmax.f32 %v2076_v59, 0.0  ;;  %vm2367_vm10 = vcmp.lt.f32.partialorder %v1290_v10, 0.0004427343 }
 0x250   :  { %v1658_v15 = vpop.eup %1657  ;;  %vm2371_vm11 = vcmp.lt.f32.partialorder %v1047_v8, 0.0004427343  ;;  %1665 = vlog2.f32 %v1050_v30  ;;  %v1299_v25 = vand.u32 2147483647, %v2335_v35  ;;  %v2378_v49 = vmax.f32 %v2078_v0, 0.0 }
 0x251   :  { %v1034_v19 = vmul.f32 0.6931472, %v1658_v15  ;;  %v1302_v56 = vadd.f32 1.0, %v2364_v44  ;;  %v1059_v2 = vadd.f32 1.0, %v811_v46  ;;  %v1046_v53 = vmul.f32 %v1045_v11, %v809_v28 }
 0x252   :  { %v1297_v42 = vadd.f32 1.0, %v1296_v34  ;;  %v1289_v47 = vmul.f32 %v1288_v45, %v2326_v22  ;;  %v1054_v21 = vadd.f32 1.0, %v1053_v20  ;;  %v1305_v38 = vmul.f32 -0.5, %v2364_v44 }
 0x253   :  { %v1660_v13 = vpop.eup %1659  ;;  %v1040_v59 = vsel %vm2358_vm9, %v1037_v7, %v1034_v19  ;;  %1667 = vlog2.f32 %v1302_v56  ;;  %v1062_v50 = vmul.f32 -0.5, %v811_v46  ;;  %vm2386_vm12 = vcmp.lt.f32.partialorder %v1299_v25, 0.0004427343 }
 0x254   :  { %v1662_v18 = vpop.eup %1661  ;;  %1448 = vst [vmem:[#allocation7 + $0xa0] sm:$0xff] %v1040_v59  ;;  %v1286_v4 = vmul.f32 0.6931472, %v1660_v13  ;;  %1669 = vlog2.f32 %v1059_v2  ;;  %v1311_v28 = vadd.f32 1.0, %v2378_v49  ;;  %v1298_v14 = vmul.f32 %v1297_v42, %v2335_v35 }
 0x255   :  { %v1043_v6 = vmul.f32 0.6931472, %v1662_v18  ;;  %v1056_v39 = vand.u32 2147483647, %v810_v60  ;;  %v812_v62 = vmax.f32 %v2096_v16, 0.0  ;;  %v1055_v9 = vmul.f32 %v1054_v21, %v810_v60 }
 0x256   :  { %v1292_v0 = vsel %vm2367_vm10, %v1289_v47, %v1286_v4  ;;  %v1664_v23 = vpop.eup %1663  ;;  %v1065_v48 = vand.u32 2147483647, %v811_v46  ;;  %1671 = vlog2.f32 %v1311_v28  ;;  %v1306_v40 = vadd.f32 1.0, %v1305_v38 }
 0x257   :  { %1476 = vst [vmem:[#allocation7 + $0x180] sm:$0xff] %v1292_v0  ;;  %v1049_v22 = vsel %vm2371_vm11, %v1046_v53, %v1043_v6  ;;  %v1295_v58 = vmul.f32 0.6931472, %v1664_v23  ;;  %v1063_v57 = vadd.f32 1.0, %v1062_v50  ;;  %v1068_v1 = vadd.f32 1.0, %v812_v62 }
 0x258   :  { %1449 = vst [vmem:[#allocation7 + $0xa8] sm:$0xff] %v1049_v22  ;;  %v1314_v55 = vmul.f32 -0.5, %v2378_v49  ;;  %v2399_v29 = vmax.f32 %v2098_v17, 0.0  ;;  %vm2401_vm13 = vcmp.lt.f32.partialorder %v1056_v39, 0.0004427343  ;;  %v1071_v26 = vmul.f32 -0.5, %v812_v62 }
 0x259   :  { %v1301_v36 = vsel %vm2386_vm12, %v1298_v14, %v1295_v58  ;;  %v1308_v10 = vand.u32 2147483647, %v2364_v44  ;;  %1673 = vlog2.f32 %v1068_v1  ;;  %vm2406_vm14 = vcmp.lt.f32.partialorder %v1065_v48, 0.0004427343 }
 0x25a   :  { %v1666_v35 = vpop.eup %1665  ;;  %1477 = vst [vmem:[#allocation7 + $0x188] sm:$0xff] %v1301_v36  ;;  %v1320_v12 = vadd.f32 1.0, %v2399_v29  ;;  %v1307_v17 = vmul.f32 %v1306_v40, %v2364_v44  ;;  %v1317_v7 = vand.u32 2147483647, %v2378_v49  ;;  %v813_v11 = vmax.f32 %v2102_v27, 0.0 }
 0x25b   :  { %v1052_v8 = vmul.f32 0.6931472, %v1666_v35  ;;  %v2415_v34 = vmax.f32 %v2108_v52, 0.0  ;;  %v1064_v45 = vmul.f32 %v1063_v57, %v811_v46  ;;  %v1315_v20 = vadd.f32 1.0, %v1314_v55 }
 0x25c   :  { %1675 = vlog2.f32 %v1320_v12  ;;  %v1074_v54 = vand.u32 2147483647, %v812_v62  ;;  %v1077_v25 = vadd.f32 1.0, %v813_v11  ;;  %vm1309_vm15 = vcmp.lt.f32.partialorder %v1308_v10, 0.0004427343 }
 0x25d   :  { %v1668_v30 = vpop.eup %1667  ;;  %v1058_v15 = vsel %vm2401_vm13, %v1055_v9, %v1052_v8  ;;  %v1072_v56 = vadd.f32 1.0, %v1071_v26  ;;  %v1329_v27 = vadd.f32 1.0, %v2415_v34  ;;  %vm2420_vm0 = vcmp.lt.f32.partialorder %v1317_v7, 0.0004427343 }
 0x25e   :  { %v1670_v19 = vpop.eup %1669  ;;  %1450 = vst [vmem:[#allocation7 + $0xb0] sm:$0xff] %v1058_v15  ;;  %v1304_v61 = vmul.f32 0.6931472, %v1668_v30  ;;  %v1323_v13 = vmul.f32 -0.5, %v2399_v29  ;;  %1677 = vlog2.f32 %v1077_v25  ;;  %v1316_v53 = vmul.f32 %v1315_v20, %v2378_v49 }
 0x25f   :  { %v1061_v44 = vmul.f32 0.6931472, %v1670_v19  ;;  %v1080_v42 = vmul.f32 -0.5, %v813_v11  ;;  %1679 = vlog2.f32 %v1329_v27  ;;  %vm2428_vm1 = vcmp.lt.f32.partialorder %v1074_v54, 0.0004427343 }
 0x260   :  { %v1310_v2 = vsel %vm1309_vm15, %v1307_v17, %v1304_v61  ;;  %v1672_v46 = vpop.eup %1671  ;;  %v814_v47 = vmax.f32 %v2113_v32, 0.0  ;;  %v1073_v21 = vmul.f32 %v1072_v56, %v812_v62  ;;  %v1326_v6 = vand.u32 2147483647, %v2399_v29 }
 0x261   :  { %1478 = vst [vmem:[#allocation7 + $0x190] sm:$0xff] %v1310_v2  ;;  %v1067_v59 = vsel %vm2406_vm14, %v1064_v45, %v1061_v44  ;;  %v1313_v18 = vmul.f32 0.6931472, %v1672_v46  ;;  %v1324_v0 = vadd.f32 1.0, %v1323_v13  ;;  %v1332_v49 = vmul.f32 -0.5, %v2415_v34 }
 0x262   :  { %1451 = vst [vmem:[#allocation7 + $0xb8] sm:$0xff] %v1067_v59  ;;  %v1086_v5 = vadd.f32 1.0, %v814_v47  ;;  %v1081_v23 = vadd.f32 1.0, %v1080_v42  ;;  %v2438_v22 = vmax.f32 %v2115_v24, 0.0  ;;  %v2441_v14 = vmax.f32 %v2123_v33, 0.0  ;;  %v2645_v42 = vld [vmem:[#allocation11_spill] sm:$0xff] }
 0x263   :  { %v1674_v38 = vpop.eup %1673  ;;  %v1319_v50 = vsel %vm2420_vm0, %v1316_v53, %v1313_v18  ;;  %v1083_v32 = vand.u32 2147483647, %v813_v11  ;;  %v2444_v39 = vmax.f32 %v2125_v43, 0.0  ;;  %vm2448_vm2 = vcmp.lt.f32.partialorder %v1326_v6, 0.0004427343 }
 0x264   :  { %1479 = vst [vmem:[#allocation7 + $0x198] sm:$0xff] %v1319_v50  ;;  %v1070_v28 = vmul.f32 0.6931472, %v1674_v38  ;;  %1681 = vlog2.f32 %v1086_v5  ;;  %v1089_v9 = vmul.f32 -0.5, %v814_v47  ;;  %v1338_v24 = vadd.f32 1.0, %v2438_v22 }
 0x265   :  { %v1325_v33 = vmul.f32 %v1324_v0, %v2399_v29  ;;  %v1333_v57 = vadd.f32 1.0, %v1332_v49  ;;  %v1095_v1 = vadd.f32 1.0, %v2441_v14  ;;  %v1082_v43 = vmul.f32 %v1081_v23, %v813_v11 }
 0x266   :  { %v1676_v62 = vpop.eup %1675  ;;  %v1076_v58 = vsel %vm2428_vm1, %v1073_v21, %v1070_v28  ;;  %v1335_v36 = vand.u32 2147483647, %v2415_v34  ;;  %1683 = vlog2.f32 %v1338_v24  ;;  %vm2458_vm3 = vcmp.lt.f32.partialorder %v1083_v32, 0.0004427343 }
 0x267   :  { %1452 = vst [vmem:[#allocation7 + $0xc0] sm:$0xff] %v1076_v58  ;;  %v1322_v40 = vmul.f32 0.6931472, %v1676_v62  ;;  %1685 = vlog2.f32 %v1095_v1  ;;  %v1347_v10 = vadd.f32 1.0, %v2444_v39  ;;  %v1090_v60 = vadd.f32 1.0, %v1089_v9 }
 0x268   :  { %v1678_v55 = vpop.eup %1677  ;;  %v1341_v26 = vmul.f32 -0.5, %v2438_v22  ;;  %v1098_v12 = vmul.f32 -0.5, %v2441_v14  ;;  %v1334_v7 = vmul.f32 %v1333_v57, %v2415_v34  ;;  %v1092_v11 = vand.u32 2147483647, %v814_v47 }
 0x269   :  { %v1328_v35 = vsel %vm2448_vm2, %v1325_v33, %v1322_v40  ;;  %v1680_v8 = vpop.eup %1679  ;;  %v1079_v29 = vmul.f32 0.6931472, %v1678_v55  ;;  %1687 = vlog2.f32 %v1347_v10  ;;  %vm1336_vm4 = vcmp.lt.f32.partialorder %v1335_v36, 0.0004427343 }
 0x26a   :  { %1480 = vst [vmem:[#allocation7 + $0x1a0] sm:$0xff] %v1328_v35  ;;  %v1331_v17 = vmul.f32 0.6931472, %v1680_v8  ;;  %v844_v15 = vmax.f32 %v2145_v31, 0.0  ;;  %v1350_v20 = vmul.f32 -0.5, %v2444_v39  ;;  %v1091_v19 = vmul.f32 %v1090_v60, %v814_v47 }
 0x26b   :  { %v1085_v30 = vsel %vm2458_vm3, %v1082_v43, %v1079_v29  ;;  %v1342_v61 = vadd.f32 1.0, %v1341_v26  ;;  %v1099_v54 = vadd.f32 1.0, %v1098_v12  ;;  %vm2470_vm5 = vcmp.lt.f32.partialorder %v1092_v11, 0.0004427343  ;;  %v2652_v26 = vld [vmem:[#allocation12_spill] sm:$0xff] }
 0x26c   :  { %1453 = vst [vmem:[#allocation7 + $0xc8] sm:$0xff] %v1085_v30  ;;  %v1337_v45 = vsel %vm1336_vm4, %v1334_v7, %v1331_v17  ;;  %v1356_v25 = vadd.f32 1.0, %v844_v15  ;;  %v1101_v56 = vand.u32 2147483647, %v2441_v14  ;;  %v2476_v27 = vmax.f32 %v2152_v63, 0.0 }
 0x26d   :  { %1481 = vst [vmem:[#allocation7 + $0x1a8] sm:$0xff] %v1337_v45  ;;  %v2479_v31 = vmax.f32 %v2155_v41, 0.0  ;;  %v1344_v52 = vand.u32 2147483647, %v2438_v22  ;;  %v1353_v13 = vand.u32 2147483647, %v2444_v39  ;;  %v1343_v41 = vmul.f32 %v1342_v61, %v2438_v22 }
 0x26e   :  { %v1682_v44 = vpop.eup %1681  ;;  %1689 = vlog2.f32 %v1356_v25  ;;  %v1351_v46 = vadd.f32 1.0, %v1350_v20  ;;  %v1365_v59 = vadd.f32 1.0, %v2476_v27  ;;  %v2486_v18 = vmax.f32 %v2645_v42, 0.0 }
 0x26f   :  { %v1088_v2 = vmul.f32 0.6931472, %v1682_v44  ;;  %v1374_v53 = vadd.f32 1.0, %v2479_v31  ;;  %v1100_v47 = vmul.f32 %v1099_v54, %v2441_v14  ;;  %v1359_v21 = vmul.f32 -0.5, %v844_v15 }
 0x270   :  { %v1684_v4 = vpop.eup %1683  ;;  %vm2492_vm6 = vcmp.lt.f32.partialorder %v1101_v56, 0.0004427343  ;;  %1691 = vlog2.f32 %v1365_v59  ;;  %vm1345_vm7 = vcmp.lt.f32.partialorder %v1344_v52, 0.0004427343  ;;  %vm2496_vm8 = vcmp.lt.f32.partialorder %v1353_v13, 0.0004427343 }
 0x271   :  { %v1094_v63 = vsel %vm2470_vm5, %v1091_v19, %v1088_v2  ;;  %v1686_v6 = vpop.eup %1685  ;;  %v1340_v38 = vmul.f32 0.6931472, %v1684_v4  ;;  %1693 = vlog2.f32 %v1374_v53  ;;  %v1352_v23 = vmul.f32 %v1351_v46, %v2444_v39 }
 0x272   :  { %1454 = vst [vmem:[#allocation7 + $0xd0] sm:$0xff] %v1094_v63  ;;  %v1097_v0 = vmul.f32 0.6931472, %v1686_v6  ;;  %v1362_v22 = vand.u32 2147483647, %v844_v15  ;;  %v1383_v14 = vadd.f32 1.0, %v2486_v18 }
 0x273   :  { %v1688_v5 = vpop.eup %1687  ;;  %v1346_v28 = vsel %vm1345_vm7, %v1343_v41, %v1340_v38  ;;  %v1360_v58 = vadd.f32 1.0, %v1359_v21  ;;  %v1368_v48 = vmul.f32 -0.5, %v2476_v27  ;;  %v1377_v9 = vmul.f32 -0.5, %v2479_v31 }
 0x274   :  { %1482 = vst [vmem:[#allocation7 + $0x1b0] sm:$0xff] %v1346_v28  ;;  %v1103_v32 = vsel %vm2492_vm6, %v1100_v47, %v1097_v0  ;;  %v1349_v62 = vmul.f32 0.6931472, %v1688_v5  ;;  %1695 = vlog2.f32 %v1383_v14  ;;  %v848_v24 = vmax.f32 %v2180_v37, 0.0 }
 0x275   :  { %1455 = vst [vmem:[#allocation7 + $0xd8] sm:$0xff] %v1103_v32  ;;  %v1371_v40 = vand.u32 2147483647, %v2476_v27  ;;  %v1386_v33 = vmul.f32 -0.5, %v2486_v18  ;;  %vm2511_vm9 = vcmp.lt.f32.partialorder %v1362_v22, 0.0004427343  ;;  %v1361_v16 = vmul.f32 %v1360_v58, %v844_v15 }
 0x276   :  { %v1355_v39 = vsel %vm2496_vm8, %v1352_v23, %v1349_v62  ;;  %v1392_v57 = vadd.f32 1.0, %v848_v24  ;;  %v1369_v36 = vadd.f32 1.0, %v1368_v48  ;;  %v849_v55 = vmax.f32 %v2189_v51, 0.0 }
 0x277   :  { %1483 = vst [vmem:[#allocation7 + $0x1b8] sm:$0xff] %v1355_v39  ;;  %v850_v35 = vmax.f32 %v2194_v3, 0.0  ;;  %v1378_v10 = vadd.f32 1.0, %v1377_v9  ;;  %v1380_v8 = vand.u32 2147483647, %v2479_v31  ;;  %v851_v12 = vmax.f32 %v2652_v26, 0.0 }
 0x278   :  { %v1690_v1 = vpop.eup %1689  ;;  %1697 = vlog2.f32 %v1392_v57  ;;  %v1401_v29 = vadd.f32 1.0, %v849_v55  ;;  %vm2521_vm10 = vcmp.lt.f32.partialorder %v1371_v40, 0.0004427343  ;;  %v1387_v51 = vadd.f32 1.0, %v1386_v33 }
 0x279   :  { %v1358_v37 = vmul.f32 0.6931472, %v1690_v1  ;;  %v1410_v60 = vadd.f32 1.0, %v850_v35  ;;  %v1370_v15 = vmul.f32 %v1369_v36, %v2476_v27  ;;  %v1395_v45 = vmul.f32 -0.5, %v848_v24 }
 0x27a   :  { %v1692_v17 = vpop.eup %1691  ;;  %1699 = vlog2.f32 %v1401_v29  ;;  %v1379_v19 = vmul.f32 %v1378_v10, %v2479_v31  ;;  %v1389_v61 = vand.u32 2147483647, %v2486_v18  ;;  %vm1381_vm11 = vcmp.lt.f32.partialorder %v1380_v8, 0.0004427343 }
 0x27b   :  { %v1364_v7 = vsel %vm2511_vm9, %v1361_v16, %v1358_v37  ;;  %v1694_v3 = vpop.eup %1693  ;;  %v1367_v30 = vmul.f32 0.6931472, %v1692_v17  ;;  %1701 = vlog2.f32 %v1410_v60  ;;  %v1419_v25 = vadd.f32 1.0, %v851_v12 }
 0x27c   :  { %1484 = vst [vmem:[#allocation7 + $0x1c0] sm:$0xff] %v1364_v7  ;;  %v1376_v20 = vmul.f32 0.6931472, %v1694_v3  ;;  %v1388_v56 = vmul.f32 %v1387_v51, %v2486_v18  ;;  %v1404_v2 = vmul.f32 -0.5, %v849_v55  ;;  %v1396_v52 = vadd.f32 1.0, %v1395_v45 }
 0x27d   :  { %v1373_v54 = vsel %vm2521_vm10, %v1370_v15, %v1367_v30  ;;  %v1413_v13 = vmul.f32 -0.5, %v850_v35  ;;  %1703 = vlog2.f32 %v1419_v25  ;;  %vm1390_vm12 = vcmp.lt.f32.partialorder %v1389_v61, 0.0004427343 }
 0x27e   :  { %v1696_v44 = vpop.eup %1695  ;;  %1485 = vst [vmem:[#allocation7 + $0x1c8] sm:$0xff] %v1373_v54  ;;  %v1382_v34 = vsel %vm1381_vm11, %v1379_v19, %v1376_v20  ;;  %v1398_v31 = vand.u32 2147483647, %v848_v24  ;;  %v1405_v53 = vadd.f32 1.0, %v1404_v2  ;;  %v1422_v42 = vmul.f32 -0.5, %v851_v12 }
 0x27f   :  { %1486 = vst [vmem:[#allocation7 + $0x1d0] sm:$0xff] %v1382_v34  ;;  %v1385_v27 = vmul.f32 0.6931472, %v1696_v44  ;;  %v1397_v63 = vmul.f32 %v1396_v52, %v848_v24  ;;  %v1407_v41 = vand.u32 2147483647, %v849_v55  ;;  %v1414_v47 = vadd.f32 1.0, %v1413_v13 }
 0x280   :  { %vm1399_vm13 = vcmp.lt.f32.partialorder %v1398_v31, 0.0004427343  ;;  %v1416_v21 = vand.u32 2147483647, %v850_v35  ;;  %v1406_v0 = vmul.f32 %v1405_v53, %v849_v55  ;;  %v1423_v49 = vadd.f32 1.0, %v1422_v42 }
 0x281   :  { %v1391_v46 = vsel %vm1390_vm12, %v1388_v56, %v1385_v27  ;;  %vm1408_vm14 = vcmp.lt.f32.partialorder %v1407_v41, 0.0004427343  ;;  %v1415_v28 = vmul.f32 %v1414_v47, %v850_v35  ;;  %v1425_v23 = vand.u32 2147483647, %v851_v12 }
 0x282   :  { %v1698_v59 = vpop.eup %1697  ;;  %1487 = vst [vmem:[#allocation7 + $0x1d8] sm:$0xff] %v1391_v46  ;;  %vm1417_vm15 = vcmp.lt.f32.partialorder %v1416_v21, 0.0004427343  ;;  %v1424_v58 = vmul.f32 %v1423_v49, %v851_v12 }
 0x283   :  { %v1394_v4 = vmul.f32 0.6931472, %v1698_v59  ;;  %vm1426_vm0 = vcmp.lt.f32.partialorder %v1425_v23, 0.0004427343 }
 0x284   :  { %v1700_v18 = vpop.eup %1699 }
 0x285   :  { %v1400_v6 = vsel %vm1399_vm13, %v1397_v63, %v1394_v4  ;;  %v1702_v38 = vpop.eup %1701  ;;  %v1403_v50 = vmul.f32 0.6931472, %v1700_v18 }
 0x286   :  { %1488 = vst [vmem:[#allocation7 + $0x1e0] sm:$0xff] %v1400_v6  ;;  %v1412_v5 = vmul.f32 0.6931472, %v1702_v38 }
 0x287   :  { %v1409_v22 = vsel %vm1408_vm14, %v1406_v0, %v1403_v50  ;;  %v1704_v14 = vpop.eup %1703 }
 0x288   :  { %1489 = vst [vmem:[#allocation7 + $0x1e8] sm:$0xff] %v1409_v22  ;;  %v1418_v32 = vsel %vm1417_vm15, %v1415_v28, %v1412_v5  ;;  %v1421_v62 = vmul.f32 0.6931472, %v1704_v14 }
 0x289   :  { %1490 = vst [vmem:[#allocation7 + $0x1f0] sm:$0xff] %v1418_v32 }
 0x28a   :  { %v1427_v48 = vsel %vm1426_vm0, %v1424_v58, %v1421_v62 }
 0x28b   :  { %1491 = vst [vmem:[#allocation7 + $0x1f8] sm:$0xff] %v1427_v48 }
 0x28c   :  { %1760 = shalt.err (!%p1757_p8)
}
 0x28d   :  { %s1761_s22 = scalar_lea.hbm %s2546_s3, 8192 }
 0x28e   :  { %p1762_p9 = scmp.ne.s32.totalorder %s2546_s3, %s1761_s22  ;;  %p1765_p10 = scmp.lt.u32.totalorder %s1761_s22, %s2546_s3 }
 0x290   :  { %p1767_p11 = pnand %p1765_p10, %p1762_p9 }
 0x292   :  { %1770 = shalt.err (!%p1767_p11)
}
 0x293   :  { %s1785_s27 = smov 256   ;;  %s1786_s28 = smov 16  }
 0x294   :  { %1503 = dma.vmem_to_hbm [thread:$0]  %s1498_s2, 8192, %s2546_s3, [#allocation4], %s1785_s27, %s1785_s27, %s1786_s28  }
 0x295   :  { %1775 = dma.done.wait [#allocation4], 8192  }
 0x296   :  { %1776 = vsyncadd [#allocation4], 4294959104 }
 0x297   :  { %1507 = vsyncpa [#allocation3], 1 }
 0x298   :  { %1508 = vsyncpa [#allocation6], 1 }
 0x299   :  { %1509 = vsyncpa [#allocation4], 1 }

</bundles_post_ra>
